<compile_context>
chip_gen: v5e
topology: v5e:2x2
jax: 0.10.0
libtpu: 0.0.40
codegen_flags: <defaults>
</compile_context>

<pallas_src>
import numpy as np
import jax
import jax.numpy as jnp
from jax import lax
from jax.experimental import pallas as pl
from jax.experimental.pallas import tpu as pltpu


_M = 4
_PI_CONST = 3.14159265  # constant used by the reference AngleLinear
# k = floor(m*acos(c)/PI) == #{ j in 1..m : c <= cos(j*PI/m) }   (cos decreasing on [0, pi])
_K_THRESH = np.cos(np.arange(1, _M + 1) * _PI_CONST / _M).astype(np.float32)

# Packed-parameter layout (one small VMEM-resident tile, sublane starts multiples of 8):
#   P[ 0:32,  0:50] = W1^T (32,50)    P[ 0:32, 50:51] = b1 (32,1)
#   P[32:40,  0:32] = W2^T (8,32)     P[32:40, 32:33] = b2 (8,1)
#   P[32:40, 33:34] = w3   (8,1)      P[40:41,  0: 1] = b3 (1,1)
_P_ROWS, _P_COLS = 48, 64


# ----------------------------------------------------------------------------
# Fused kernel: trans-MLP + AngleLinear head, chunked over N with accumulators
# ----------------------------------------------------------------------------
def as_model_kernel(feat_ref, w_ref, p_ref, out_ref, acc_ref, wsq_ref, xsq_ref):
    n = pl.program_id(1)

    @pl.when(n == 0)
    def _():
        acc_ref[...] = jnp.zeros_like(acc_ref)
        wsq_ref[...] = jnp.zeros_like(wsq_ref)
        xsq_ref[...] = jnp.zeros_like(xsq_ref)

    # Unpack the tiny MLP parameters (static slices of the packed tile).
    w1t = p_ref[0:32, 0:50]       # (32, 50)
    b1 = p_ref[0:32, 50:51]       # (32, 1)
    w2t = p_ref[32:40, 0:32]      # (8, 32)
    b2 = p_ref[32:40, 32:33]      # (8, 1)
    w3c = p_ref[32:40, 33:34]     # (8, 1)
    b3 = p_ref[40:41, 0:1]        # (1, 1)

    x = feat_ref[0]               # (Nc, 50): this batch's chunk, natural (N, F) layout

    # trans_layer MLP, computed transposed so the N positions stay on the lane axis.
    # The first matmul contracts the last dims of both operands (q@k^T pattern), so no
    # explicit transpose of x is ever materialized.
    h1 = jnp.maximum(
        lax.dot_general(w1t, x, (((1,), (1,)), ((), ())),
                        preferred_element_type=jnp.float32) + b1, 0.0)                  # (32, Nc)
    h2 = jnp.maximum(jnp.dot(w2t, h1, preferred_element_type=jnp.float32) + b2, 0.0)    # (8, Nc)
    # 8 -> 1 projection on the VPU/XLU (a 1-wide MXU push would be pure padding).
    xr = jnp.maximum(jnp.sum(h2 * w3c, axis=0, keepdims=True) + b3, 0.0)                # (1, Nc)

    # AngleLinear partial reductions (finalized at the last chunk).
    acc_ref[...] += jnp.dot(xr, w_ref[...], preferred_element_type=jnp.float32)         # (1, C)
    xsq_ref[...] += jnp.sum(xr * xr, axis=1, keepdims=True)                             # (1, 1)
    wsq_ref[...] += jnp.sum(w_ref[...] * w_ref[...], axis=0, keepdims=True)             # (1, C)

    @pl.when(n == pl.num_programs(1) - 1)
    def _():
        xlen = jnp.sqrt(xsq_ref[...])                                   # (1, 1)
        wlen = jnp.sqrt(wsq_ref[...])                                   # (1, C)
        # cos = x @ (w/||w||_col) / ||x||   (the reference's renorm(...)*1e5 cancels out)
        # (no epsilon on xlen, matching the PyTorch reference for all-zero rows)
        cos = jnp.clip(acc_ref[...] / (xlen * wlen), -1.0, 1.0)
        c2 = cos * cos
        cos_m = 8.0 * c2 * c2 - 8.0 * c2 + 1.0                          # T_4(cos) = cos(4*theta)
        k = jnp.zeros_like(cos)
        for t in _K_THRESH:                                             # k = floor(4*acos(c)/pi)
            k = k + (cos <= jnp.float32(t)).astype(jnp.float32)
        sign = 1.0 - 2.0 * jnp.mod(k, 2.0)                              # (-1)**k, k integer-valued
        phi = sign * cos_m - 2.0 * k
        out_ref[0] = jnp.concatenate([cos * xlen, phi * xlen], axis=-1)  # (1, 2C)


def _pack_params(params):
    p = jnp.zeros((_P_ROWS, _P_COLS), jnp.float32)
    p = p.at[0:32, 0:50].set(params["w1"].T)
    p = p.at[0:32, 50:51].set(params["b1"].reshape(32, 1))
    p = p.at[32:40, 0:32].set(params["w2"].T)
    p = p.at[32:40, 32:33].set(params["b2"].reshape(8, 1))
    p = p.at[32:40, 33:34].set(params["w3"].reshape(8, 1))
    p = p.at[40:41, 0:1].set(params["b3"].reshape(1, 1))
    return p


def as_model_forward(feat, params, *, n_chunk=1024):
    """feat: (B, N=2048, F=50) -> (cos_theta*||x||, phi_theta*||x||), each (B, num_classes)."""
    B, N, F = feat.shape
    C = params["as_w"].shape[1]
    n_chunk = min(n_chunk, N)
    assert N % n_chunk == 0, "bank positions must be divisible by the chunk size"
    num_chunks = N // n_chunk

    packed = _pack_params(params)   # tiny, input-independent (precompute once in real use)

    fused = pl.pallas_call(
        as_model_kernel,
        out_shape=jax.ShapeDtypeStruct((B, 1, 2 * C), jnp.float32),
        grid=(B, num_chunks),
        in_specs=[
            pl.BlockSpec((1, n_chunk, F), lambda b, n: (b, n, 0)),    # feat chunk (no transpose)
            pl.BlockSpec((n_chunk, C), lambda b, n: (n, 0)),          # raw AngleLinear weight chunk
            pl.BlockSpec((_P_ROWS, _P_COLS), lambda b, n: (0, 0)),    # packed MLP params (resident)
        ],
        out_specs=pl.BlockSpec((1, 1, 2 * C), lambda b, n: (b, 0, 0)),
        scratch_shapes=[
            pltpu.VMEM((1, C), jnp.float32),    # partial  x @ w
            pltpu.VMEM((1, C), jnp.float32),    # partial ||w||^2 per column
            pltpu.VMEM((1, 1), jnp.float32),    # partial ||x||^2
        ],
        compiler_params=pltpu.CompilerParams(
            dimension_semantics=("parallel", "arbitrary")),
    )(feat, params["as_w"], packed)

    fused = fused.reshape(B, 2 * C)
    return fused[:, :C], fused[:, C:]


# ----------------------------------------------------------------------------
# Pure-JAX reference (faithful to the PyTorch formulation, incl. renorm + wlen)
# ----------------------------------------------------------------------------
def as_model_reference(feat, params):
    B, N, F = feat.shape
    x = feat.reshape(B * N, F)
    h = jnp.maximum(x @ params["w1"] + params["b1"], 0.0)
    h = jnp.maximum(h @ params["w2"] + params["b2"], 0.0)
    h = jnp.maximum(h @ params["w3"] + params["b3"], 0.0)
    xv = h.reshape(B, N)

    w = params["as_w"]
    wnorm = jnp.sqrt(jnp.sum(w * w, axis=0, keepdims=True))
    scale = jnp.where(wnorm > 1e-5, 1e-5 / (wnorm + 1e-7), 1.0) * 1e5  # renorm(2,1,1e-5).mul(1e5)
    ww = w * scale
    wlen = jnp.sqrt(jnp.sum(ww * ww, axis=0, keepdims=True))
    xlen = jnp.sqrt(jnp.sum(xv * xv, axis=1, keepdims=True))

    cos = jnp.clip((xv @ ww) / xlen / wlen, -1.0, 1.0)
    c2 = cos * cos
    cos_m = 8.0 * c2 * c2 - 8.0 * c2 + 1.0
    theta = jnp.arccos(cos)
    k = jnp.floor(_M * theta / _PI_CONST)
    sign = 1.0 - 2.0 * jnp.mod(k, 2.0)
    phi = sign * cos_m - 2.0 * k
    return cos * xlen, phi * xlen


def init_params(key, n_positions=2048, num_classes=10):
    ks = jax.random.split(key, 7)

    def lin(kw, kb, fin, fout):
        bound = 1.0 / np.sqrt(fin)                         # nn.Linear default init
        wt = jax.random.uniform(kw, (fin, fout), jnp.float32, -bound, bound)
        bt = jax.random.uniform(kb, (fout,), jnp.float32, -bound, bound)
        return wt, bt

    w1, b1 = lin(ks[0], ks[1], 50, 32)
    w2, b2 = lin(ks[2], ks[3], 32, 8)
    w3, b3 = lin(ks[4], ks[5], 8, 1)
    # AngleLinear weight: uniform(-1, 1); its column normalization happens in-kernel.
    as_w = jax.random.uniform(ks[6], (n_positions, num_classes), jnp.float32, -1.0, 1.0)
    return dict(w1=w1, b1=b1, w2=w2, b2=b2, w3=w3, b3=b3, as_w=as_w)


if __name__ == "__main__":
    key = jax.random.PRNGKey(0)
    kf, kp = jax.random.split(key)

    B, N, F = 2, 2048, 50          # feat shape implied by Linear(50,..) and AngleLinear(2048,..)
    num_classes = 10               # config.numcls

    feat = jax.random.normal(kf, (B, N, F), jnp.float32)
    params = init_params(kp, n_positions=N, num_classes=num_classes)

    cos_out, phi_out = jax.jit(as_model_forward)(feat, params)
    jax.block_until_ready((cos_out, phi_out))

    cos_ref, phi_ref = as_model_reference(feat, params)

    assert cos_out.shape == (B, num_classes) and phi_out.shape == (B, num_classes)
    assert bool(jnp.all(jnp.isfinite(cos_out))) and bool(jnp.all(jnp.isfinite(phi_out)))
    assert bool(jnp.allclose(cos_out, cos_ref, rtol=5e-3, atol=5e-3)), "cos mismatch vs reference"
    assert bool(jnp.allclose(phi_out, phi_ref, rtol=5e-3, atol=5e-3)), "phi mismatch vs reference"
    print("KERNEL_OK")
</pallas_src>

<mosaic_0001>
module attributes {stable_mosaic.version = 11 : i64} {
  func.func @as_model_kernel(%arg0: i32, %arg1: i32, %arg2: memref<1x1024x50xf32, #tpu.memory_space<vmem>>, %arg3: memref<1024x10xf32, #tpu.memory_space<vmem>>, %arg4: memref<48x64xf32, #tpu.memory_space<vmem>>, %arg5: memref<1x1x20xf32, #tpu.memory_space<vmem>>, %arg6: memref<1x10xf32, #tpu.memory_space<vmem>>, %arg7: memref<1x10xf32, #tpu.memory_space<vmem>>, %arg8: memref<1x1xf32, #tpu.memory_space<vmem>>) attributes {dimension_semantics = [#tpu.dimension_semantics<parallel>, #tpu.dimension_semantics<arbitrary>], iteration_bounds = array<i64: 2, 2>, scalar_prefetch = 0 : i64, scratch_operands = 3 : i64, tpu.core_type = #tpu.core_type<tc>, window_params = [{transform_indices = @transform_0, window_bounds = array<i64: 1, 1024, 50>}, {transform_indices = @transform_1, window_bounds = array<i64: 1024, 10>}, {pipeline_mode = #tpu.pipeline_mode<synchronous>, transform_indices = @transform_2, window_bounds = array<i64: 48, 64>}, {transform_indices = @transform_3, window_bounds = array<i64: 1, 1, 20>}]} {
    %c0_i32 = arith.constant 0 : i32
    %0 = arith.cmpi eq, %arg1, %c0_i32 : i32
    %1 = arith.extui %0 : i1 to i32
    %c0_i32_0 = arith.constant 0 : i32
    %2 = arith.cmpi ne, %1, %c0_i32_0 : i32
    scf.if %2 {
      %cst_38 = arith.constant 0.000000e+00 : f32
      %51 = vector.broadcast %cst_38 : f32 to vector<1x10xf32>
      %c0_39 = arith.constant 0 : index
      %c0_40 = arith.constant 0 : index
      %52 = vector.load %arg6[%c0_39, %c0_40] : memref<1x10xf32, #tpu.memory_space<vmem>>, vector<1x10xf32>
      tpu.vector_store %arg6[%c0_39, %c0_40], %51 {strides = array<i32>} : memref<1x10xf32, #tpu.memory_space<vmem>>, vector<1x10xf32>,
      %cst_41 = arith.constant 0.000000e+00 : f32
      %53 = vector.broadcast %cst_41 : f32 to vector<1x10xf32>
      %c0_42 = arith.constant 0 : index
      %c0_43 = arith.constant 0 : index
      %54 = vector.load %arg7[%c0_42, %c0_43] : memref<1x10xf32, #tpu.memory_space<vmem>>, vector<1x10xf32>
      tpu.vector_store %arg7[%c0_42, %c0_43], %53 {strides = array<i32>} : memref<1x10xf32, #tpu.memory_space<vmem>>, vector<1x10xf32>,
      %cst_44 = arith.constant 0.000000e+00 : f32
      %55 = vector.broadcast %cst_44 : f32 to vector<1x1xf32>
      %c0_45 = arith.constant 0 : index
      %c0_46 = arith.constant 0 : index
      %56 = vector.load %arg8[%c0_45, %c0_46] : memref<1x1xf32, #tpu.memory_space<vmem>>, vector<1x1xf32>
      tpu.vector_store %arg8[%c0_45, %c0_46], %55 {strides = array<i32>} : memref<1x1xf32, #tpu.memory_space<vmem>>, vector<1x1xf32>,
    } else {
    }
    %c0 = arith.constant 0 : index
    %c0_1 = arith.constant 0 : index
    %3 = vector.load %arg4[%c0, %c0_1] : memref<48x64xf32, #tpu.memory_space<vmem>>, vector<32x50xf32>
    %c0_2 = arith.constant 0 : index
    %c50 = arith.constant 50 : index
    %4 = vector.load %arg4[%c0_2, %c50] : memref<48x64xf32, #tpu.memory_space<vmem>>, vector<32x1xf32>
    %c32 = arith.constant 32 : index
    %c0_3 = arith.constant 0 : index
    %5 = vector.load %arg4[%c32, %c0_3] : memref<48x64xf32, #tpu.memory_space<vmem>>, vector<8x32xf32>
    %c32_4 = arith.constant 32 : index
    %c32_5 = arith.constant 32 : index
    %6 = vector.load %arg4[%c32_4, %c32_5] : memref<48x64xf32, #tpu.memory_space<vmem>>, vector<8x1xf32>
    %c32_6 = arith.constant 32 : index
    %c33 = arith.constant 33 : index
    %7 = vector.load %arg4[%c32_6, %c33] : memref<48x64xf32, #tpu.memory_space<vmem>>, vector<8x1xf32>
    %c40 = arith.constant 40 : index
    %c0_7 = arith.constant 0 : index
    %8 = vector.load %arg4[%c40, %c0_7] : memref<48x64xf32, #tpu.memory_space<vmem>>, vector<1x1xf32>
    %c0_8 = arith.constant 0 : index
    %c0_9 = arith.constant 0 : index
    %c0_10 = arith.constant 0 : index
    %9 = vector.load %arg2[%c0_8, %c0_9, %c0_10] : memref<1x1024x50xf32, #tpu.memory_space<vmem>>, vector<1x1024x50xf32>
    %10 = vector.shape_cast %9 : vector<1x1024x50xf32> to vector<1024x50xf32>
    %cst = arith.constant dense<0.000000e+00> : vector<32x1024xf32>
    %11 = tpu.matmul %3, %10, %cst {dimension_numbers = #tpu.dot_dimension_numbers<[1], [1], [0], [0], [0, 0, 1, 0], [], []>} : vector<32x50xf32>, vector<1024x50xf32>, vector<32x1024xf32> -> vector<32x1024xf32>
    %12 = vector.broadcast %4 : vector<32x1xf32> to vector<32x1024xf32>
    %13 = arith.addf %11, %12 : vector<32x1024xf32>
    %cst_11 = arith.constant 0.000000e+00 : f32
    %14 = vector.broadcast %cst_11 : f32 to vector<32x1024xf32>
    %15 = arith.maximumf %13, %14 : vector<32x1024xf32>
    %cst_12 = arith.constant dense<0.000000e+00> : vector<8x1024xf32>
    %16 = tpu.matmul %5, %15, %cst_12 {dimension_numbers = #tpu.dot_dimension_numbers<[1], [0], [0], [1], [0, 0, 1, 1], [], []>} : vector<8x32xf32>, vector<32x1024xf32>, vector<8x1024xf32> -> vector<8x1024xf32>
    %17 = vector.broadcast %6 : vector<8x1xf32> to vector<8x1024xf32>
    %18 = arith.addf %16, %17 : vector<8x1024xf32>
    %cst_13 = arith.constant 0.000000e+00 : f32
    %19 = vector.broadcast %cst_13 : f32 to vector<8x1024xf32>
    %20 = arith.maximumf %18, %19 : vector<8x1024xf32>
    %21 = vector.broadcast %7 : vector<8x1xf32> to vector<8x1024xf32>
    %22 = arith.mulf %20, %21 : vector<8x1024xf32>
    %cst_14 = arith.constant dense<0.000000e+00> : vector<1024xf32>
    %23 = vector.multi_reduction <add>, %22, %cst_14 [0] : vector<8x1024xf32> to vector<1024xf32>
    %24 = vector.shape_cast %23 : vector<1024xf32> to vector<1x1024xf32>
    %25 = vector.broadcast %8 : vector<1x1xf32> to vector<1x1024xf32>
    %26 = arith.addf %24, %25 : vector<1x1024xf32>
    %cst_15 = arith.constant 0.000000e+00 : f32
    %27 = vector.broadcast %cst_15 : f32 to vector<1x1024xf32>
    %28 = arith.maximumf %26, %27 : vector<1x1024xf32>
    %c0_16 = arith.constant 0 : index
    %c0_17 = arith.constant 0 : index
    %29 = vector.load %arg6[%c0_16, %c0_17] : memref<1x10xf32, #tpu.memory_space<vmem>>, vector<1x10xf32>
    %c0_18 = arith.constant 0 : index
    %c0_19 = arith.constant 0 : index
    %30 = vector.load %arg3[%c0_18, %c0_19] : memref<1024x10xf32, #tpu.memory_space<vmem>>, vector<1024x10xf32>
    %cst_20 = arith.constant dense<0.000000e+00> : vector<1x10xf32>
    %31 = tpu.matmul %28, %30, %cst_20 {dimension_numbers = #tpu.dot_dimension_numbers<[1], [0], [0], [1], [0, 0, 1, 1], [], []>} : vector<1x1024xf32>, vector<1024x10xf32>, vector<1x10xf32> -> vector<1x10xf32>
    %32 = arith.addf %29, %31 : vector<1x10xf32>
    %c0_21 = arith.constant 0 : index
    %c0_22 = arith.constant 0 : index
    %33 = vector.load %arg6[%c0_21, %c0_22] : memref<1x10xf32, #tpu.memory_space<vmem>>, vector<1x10xf32>
    tpu.vector_store %arg6[%c0_21, %c0_22], %32 {strides = array<i32>} : memref<1x10xf32, #tpu.memory_space<vmem>>, vector<1x10xf32>,
    %c0_23 = arith.constant 0 : index
    %c0_24 = arith.constant 0 : index
    %34 = vector.load %arg8[%c0_23, %c0_24] : memref<1x1xf32, #tpu.memory_space<vmem>>, vector<1x1xf32>
    %35 = arith.mulf %28, %28 : vector<1x1024xf32>
    %cst_25 = arith.constant dense<0.000000e+00> : vector<1xf32>
    %36 = vector.multi_reduction <add>, %35, %cst_25 [1] : vector<1x1024xf32> to vector<1xf32>
    %37 = vector.shape_cast %36 : vector<1xf32> to vector<1x1xf32>
    %38 = arith.addf %34, %37 : vector<1x1xf32>
    %c0_26 = arith.constant 0 : index
    %c0_27 = arith.constant 0 : index
    %39 = vector.load %arg8[%c0_26, %c0_27] : memref<1x1xf32, #tpu.memory_space<vmem>>, vector<1x1xf32>
    tpu.vector_store %arg8[%c0_26, %c0_27], %38 {strides = array<i32>} : memref<1x1xf32, #tpu.memory_space<vmem>>, vector<1x1xf32>,
    %c0_28 = arith.constant 0 : index
    %c0_29 = arith.constant 0 : index
    %40 = vector.load %arg7[%c0_28, %c0_29] : memref<1x10xf32, #tpu.memory_space<vmem>>, vector<1x10xf32>
    %c0_30 = arith.constant 0 : index
    %c0_31 = arith.constant 0 : index
    %41 = vector.load %arg3[%c0_30, %c0_31] : memref<1024x10xf32, #tpu.memory_space<vmem>>, vector<1024x10xf32>
    %c0_32 = arith.constant 0 : index
    %c0_33 = arith.constant 0 : index
    %42 = vector.load %arg3[%c0_32, %c0_33] : memref<1024x10xf32, #tpu.memory_space<vmem>>, vector<1024x10xf32>
    %43 = arith.mulf %41, %42 : vector<1024x10xf32>
    %cst_34 = arith.constant dense<0.000000e+00> : vector<10xf32>
    %44 = vector.multi_reduction <add>, %43, %cst_34 [0] : vector<1024x10xf32> to vector<10xf32>
    %45 = vector.shape_cast %44 : vector<10xf32> to vector<1x10xf32>
    %46 = arith.addf %40, %45 : vector<1x10xf32>
    %c0_35 = arith.constant 0 : index
    %c0_36 = arith.constant 0 : index
    %47 = vector.load %arg7[%c0_35, %c0_36] : memref<1x10xf32, #tpu.memory_space<vmem>>, vector<1x10xf32>
    tpu.vector_store %arg7[%c0_35, %c0_36], %46 {strides = array<i32>} : memref<1x10xf32, #tpu.memory_space<vmem>>, vector<1x10xf32>,
    %c1_i32 = arith.constant 1 : i32
    %48 = arith.cmpi eq, %arg1, %c1_i32 : i32
    %49 = arith.extui %48 : i1 to i32
    %c0_i32_37 = arith.constant 0 : i32
    %50 = arith.cmpi ne, %49, %c0_i32_37 : i32
    scf.if %50 {
      %c0_38 = arith.constant 0 : index
      %c0_39 = arith.constant 0 : index
      %51 = vector.load %arg8[%c0_38, %c0_39] : memref<1x1xf32, #tpu.memory_space<vmem>>, vector<1x1xf32>
      %52 = math.sqrt %51 : vector<1x1xf32>
      %c0_40 = arith.constant 0 : index
      %c0_41 = arith.constant 0 : index
      %53 = vector.load %arg7[%c0_40, %c0_41] : memref<1x10xf32, #tpu.memory_space<vmem>>, vector<1x10xf32>
      %54 = math.sqrt %53 : vector<1x10xf32>
      %c0_42 = arith.constant 0 : index
      %c0_43 = arith.constant 0 : index
      %55 = vector.load %arg6[%c0_42, %c0_43] : memref<1x10xf32, #tpu.memory_space<vmem>>, vector<1x10xf32>
      %56 = vector.broadcast %52 : vector<1x1xf32> to vector<1x10xf32>
      %57 = arith.mulf %56, %54 : vector<1x10xf32>
      %58 = arith.divf %55, %57 : vector<1x10xf32>
      %cst_44 = arith.constant -1.000000e+00 : f32
      %cst_45 = arith.constant 1.000000e+00 : f32
      %59 = vector.broadcast %cst_44 : f32 to vector<1x10xf32>
      %60 = arith.maximumf %59, %58 : vector<1x10xf32>
      %61 = vector.broadcast %cst_45 : f32 to vector<1x10xf32>
      %62 = arith.minimumf %61, %60 : vector<1x10xf32>
      %63 = arith.mulf %62, %62 : vector<1x10xf32>
      %cst_46 = arith.constant 8.000000e+00 : f32
      %64 = vector.broadcast %cst_46 : f32 to vector<1x10xf32>
      %65 = arith.mulf %64, %63 : vector<1x10xf32>
      %66 = arith.mulf %65, %63 : vector<1x10xf32>
      %cst_47 = arith.constant 8.000000e+00 : f32
      %67 = vector.broadcast %cst_47 : f32 to vector<1x10xf32>
      %68 = arith.mulf %67, %63 : vector<1x10xf32>
      %69 = arith.subf %66, %68 : vector<1x10xf32>
      %cst_48 = arith.constant 1.000000e+00 : f32
      %70 = vector.broadcast %cst_48 : f32 to vector<1x10xf32>
      %71 = arith.addf %69, %70 : vector<1x10xf32>
      %cst_49 = arith.constant 0.000000e+00 : f32
      %72 = vector.broadcast %cst_49 : f32 to vector<1x10xf32>
      %cst_50 = arith.constant 0.707106769 : f32
      %73 = vector.broadcast %cst_50 : f32 to vector<1x10xf32>
      %74 = arith.cmpf ole, %62, %73 : vector<1x10xf32>
      %75 = arith.extui %74 : vector<1x10xi1> to vector<1x10xi32>
      %76 = arith.sitofp %75 : vector<1x10xi32> to vector<1x10xf32>
      %77 = arith.addf %72, %76 : vector<1x10xf32>
      %cst_51 = arith.constant 1.79489656E-9 : f32
      %78 = vector.broadcast %cst_51 : f32 to vector<1x10xf32>
      %79 = arith.cmpf ole, %62, %78 : vector<1x10xf32>
      %80 = arith.extui %79 : vector<1x10xi1> to vector<1x10xi32>
      %81 = arith.sitofp %80 : vector<1x10xi32> to vector<1x10xf32>
      %82 = arith.addf %77, %81 : vector<1x10xf32>
      %cst_52 = arith.constant -0.707106769 : f32
      %83 = vector.broadcast %cst_52 : f32 to vector<1x10xf32>
      %84 = arith.cmpf ole, %62, %83 : vector<1x10xf32>
      %85 = arith.extui %84 : vector<1x10xi1> to vector<1x10xi32>
      %86 = arith.sitofp %85 : vector<1x10xi32> to vector<1x10xf32>
      %87 = arith.addf %82, %86 : vector<1x10xf32>
      %cst_53 = arith.constant -1.000000e+00 : f32
      %88 = vector.broadcast %cst_53 : f32 to vector<1x10xf32>
      %89 = arith.cmpf ole, %62, %88 : vector<1x10xf32>
      %90 = arith.extui %89 : vector<1x10xi1> to vector<1x10xi32>
      %91 = arith.sitofp %90 : vector<1x10xi32> to vector<1x10xf32>
      %92 = arith.addf %87, %91 : vector<1x10xf32>
      %cst_54 = arith.constant 2.000000e+00 : f32
      %93 = vector.broadcast %cst_54 : f32 to vector<1x10xf32>
      %94 = arith.remf %92, %93 : vector<1x10xf32>
      %cst_55 = arith.constant 0.000000e+00 : f32
      %95 = vector.broadcast %cst_55 : f32 to vector<1x10xf32>
      %96 = arith.cmpf one, %94, %95 : vector<1x10xf32>
      %cst_56 = arith.constant 0.000000e+00 : f32
      %97 = vector.broadcast %cst_56 : f32 to vector<1x10xf32>
      %98 = arith.cmpf olt, %94, %97 : vector<1x10xf32>
      %cst_57 = arith.constant 0.000000e+00 : f32
      %99 = arith.cmpf olt, %cst_54, %cst_57 : f32
      %100 = vector.broadcast %99 : i1 to vector<1x10xi1>
      %101 = vector.broadcast %100 : vector<1x10xi1> to vector<1x10xi1>
      %102 = arith.xori %98, %101 : vector<1x10xi1>
      %103 = arith.andi %102, %96 : vector<1x10xi1>
      %104 = vector.broadcast %cst_54 : f32 to vector<1x10xf32>
      %105 = arith.addf %94, %104 : vector<1x10xf32>
      %106 = arith.select %103, %105, %94 : vector<1x10xi1>, vector<1x10xf32>
      %cst_58 = arith.constant 2.000000e+00 : f32
      %107 = vector.broadcast %cst_58 : f32 to vector<1x10xf32>
      %108 = arith.mulf %107, %106 : vector<1x10xf32>
      %cst_59 = arith.constant 1.000000e+00 : f32
      %109 = vector.broadcast %cst_59 : f32 to vector<1x10xf32>
      %110 = arith.subf %109, %108 : vector<1x10xf32>
      %111 = arith.mulf %110, %71 : vector<1x10xf32>
      %cst_60 = arith.constant 2.000000e+00 : f32
      %112 = vector.broadcast %cst_60 : f32 to vector<1x10xf32>
      %113 = arith.mulf %112, %92 : vector<1x10xf32>
      %114 = arith.subf %111, %113 : vector<1x10xf32>
      %115 = vector.broadcast %52 : vector<1x1xf32> to vector<1x10xf32>
      %116 = arith.mulf %62, %115 : vector<1x10xf32>
      %117 = vector.broadcast %52 : vector<1x1xf32> to vector<1x10xf32>
      %118 = arith.mulf %114, %117 : vector<1x10xf32>
      %119 = tpu.concatenate %116, %118 in 1 : vector<1x10xf32>, vector<1x10xf32> -> vector<1x20xf32>
      %c0_61 = arith.constant 0 : index
      %c0_62 = arith.constant 0 : index
      %c0_63 = arith.constant 0 : index
      %120 = vector.load %arg5[%c0_61, %c0_62, %c0_63] : memref<1x1x20xf32, #tpu.memory_space<vmem>>, vector<1x1x20xf32>
      %121 = vector.shape_cast %120 : vector<1x1x20xf32> to vector<1x20xf32>
      %122 = vector.shape_cast %119 : vector<1x20xf32> to vector<1x1x20xf32>
      tpu.vector_store %arg5[%c0_61, %c0_62, %c0_63], %122 {strides = array<i32>} : memref<1x1x20xf32, #tpu.memory_space<vmem>>, vector<1x1x20xf32>,
    } else {
    }
    return
  }
  func.func @transform_0(%arg0: i32, %arg1: i32) -> (i32, i32, i32) {
    %c0_i32 = arith.constant 0 : i32
    %c0_i32_0 = arith.constant 0 : i32
    return %arg0, %arg1, %c0_i32 : i32, i32, i32
  }
  func.func @transform_1(%arg0: i32, %arg1: i32) -> (i32, i32) {
    %c0_i32 = arith.constant 0 : i32
    %c0_i32_0 = arith.constant 0 : i32
    return %arg1, %c0_i32 : i32, i32
  }
  func.func @transform_2(%arg0: i32, %arg1: i32) -> (i32, i32) {
    %c0_i32 = arith.constant 0 : i32
    %c0_i32_0 = arith.constant 0 : i32
    %c0_i32_1 = arith.constant 0 : i32
    return %c0_i32, %c0_i32_0 : i32, i32
  }
  func.func @transform_3(%arg0: i32, %arg1: i32) -> (i32, i32, i32) {
    %c0_i32 = arith.constant 0 : i32
    %c0_i32_0 = arith.constant 0 : i32
    %c0_i32_1 = arith.constant 0 : i32
    return %arg0, %c0_i32, %c0_i32_0 : i32, i32, i32
  }
}

</mosaic_0001>

<bundles_post_ra>
// kernel: as_model_forward.1
= control target key start
LH: loop header
LB: loop body
LE: loop exit
PB: predicated region body
PF: predicated region fallthrough
CT: control target
= control target key end

     0   :  { %s2645_s12 = smov 0   ;;  %s2647_s13 = smov 0   ;;  %s3985_s0 = inlined_call_operand.vmem [shape: f32[2,2048,50], index: 0, kind: input, shape index: {}]   ;;  %s3986_s1 = inlined_call_operand.vmem [shape: f32[2048,10], index: 1, kind: input, shape index: {}]   ;;  %s3987_s2 = inlined_call_operand.vmem [shape: f32[48,64], index: 2, kind: input, shape index: {}]   ;;  %s3988_s3 = inlined_call_operand.vmem [shape: f32[2,1,20], index: 3, kind: output, shape index: {}]  }
   0x1   :  { %s2649_s14 = smov 0   ;;  %s2651_s15 = smov 0  }
   0x2   :  { %s2653_s16 = smov 0  }
   0x3 LB: > { %s22_s17 = sadd.s32 1, %s2606_s14  ;;  %s25_s18 = sadd.s32 1, %s2610_s15  ;;  %s2614_s16 = sphi %s2653_s16, %s13_s16   ;;  %s2610_s15 = sphi %s2651_s15, %s4058_s15   ;;  %s2606_s14 = sphi %s2649_s14, %s4057_s14   ;;  %s2602_s13 = sphi %s2647_s13, %s4056_s13   ;;  %s2598_s12 = sphi %s2645_s12, %s4055_s12  }
   0x4   : > { %p23_p0 = scmp.ge.s32.totalorder %s22_s17, 2  ;;  %p2330_p1 = scmp.ge.s32.totalorder %s2614_s16, 1 }
   0x5   : > { %p167_p2 = scmp.lt.s32.totalorder %s2614_s16, 5 }
   0x6   : > { %s4060_s17 = smov (%p23_p0, %s22_s17), 0  ;;  %s4062_s18 = smov (!%p23_p0, %s25_s18), %s2610_s15 }
   0x7   : > { %p168_p3 = pnand %p2330_p1, %p167_p2  ;;  %p27_p4 = scmp.ge.s32.totalorder %s4062_s18, 2 }
   0x9   : > { %s4064_s18 = smov (%p27_p4, %s4062_s18), 0  ;;  %171 = sbr.rel (%p168_p3) target bundleno = 938 (0x3aa), region = 32 }
   0xe   : > { %s2331_s19 = sshll.u32 %s2598_s12, 7  ;;  %p199_p5 = scmp.lt.s32.totalorder %s2602_s13, 1 }
   0xf   : > { %p201_p6 = scmp.lt.s32.totalorder %s2331_s19, 255  ;;  %p2336_p7 = scmp.ne.s32.totalorder %s2598_s12, 0 }
  0x10   : > { %s4066_s13 = smov (!%p199_p5, %s2602_s13), 1 }
  0x11   : > { %s4068_s19 = smov (!%p201_p6, %s2331_s19), 255  ;;  %s2332_s20 = sshll.u32 %s4066_s13, 8 }
  0x12   : > { %s216_s23 = scalar_lea.vmem %s3988_s3, %s4066_s13  ;;  %s204_s24 = sadd.s32 %s2332_s20, %s4068_s19 }
  0x13   : > { %s2335_s25 = sshll.u32 %s4068_s19, 3  ;;  %s2333_s26 = sshll.u32 %s204_s24, 3 }
  0x14   : > { %s2688_s29 = scalar_lea.vmem %s3986_s1, %s2335_s25  ;;  %s2693_s5 = scalar_lea.vmem %s3985_s0, %s2333_s26 }
  0x15   : > { %220 = sbr.rel (%p2336_p7) target bundleno = 30 (0x1e), region = 36 }
  0x1a   : > { %vm221_vm0 = vcmask 73728   ;;  %vm224_vm1 = vcmask 0   ;;  %v2616_v0 = vmov 0.0  }
  0x1b   : > { %222 = vst.msk [vmem:[#allocation2] sm:$0x1] %vm221_vm0, %v2616_v0 }
  0x1c   : > { %223 = vst.msk [vmem:[#allocation3] sm:$0x1] %vm221_vm0, %v2616_v0 }
  0x1d   : > { %225 = vst.msk [vmem:[#allocation4] sm:$0x1] %vm224_vm1, %v2616_v0 }
  0x1e PF: > { %v247_v1 = vld [vmem:[%s2693_s5 + $0x78] sm:$0xff]  ;;  %vm380_vm2 = vcmask 408576   ;;  %v246_v5 = vld [vmem:[%s2693_s5 + $0x70] sm:$0xff]  ;;  %v245_v9 = vld [vmem:[%s2693_s5 + $0x68] sm:$0xff]  ;;  %vm1042_vm3 = vcmask 261120   ;;  %vm1873_vm4 = vcmask 80896  }
  0x1f   : > { %v263_v2 = vld [vmem:[%s2693_s5 + $0xf8] sm:$0xff]  ;;  %2337 = vmatpush.xpose.msk.msra.mxu0 %vm380_vm2, %v247_v1  ;;  %v262_v6 = vld [vmem:[%s2693_s5 + $0xf0] sm:$0xff]  ;;  %v261_v10 = vld [vmem:[%s2693_s5 + $0xe8] sm:$0xff]  ;;  %vm1595_vm5 = vcmask 1040384   ;;  %vm1584_vm6 = vcmask 73728   ;;  %vm1614_vm7 = vcmask 0  }
  0x20   : > { %v279_v3 = vld [vmem:[%s2693_s5 + $0x178] sm:$0xff]  ;;  %2357 = vmatpush.xpose.msk.msra.mxu1 %vm380_vm2, %v263_v2  ;;  %v278_v7 = vld [vmem:[%s2693_s5 + $0x170] sm:$0xff]  ;;  %v277_v11 = vld [vmem:[%s2693_s5 + $0x168] sm:$0xff]  ;;  %p2505_p8 = scmp.ne.s32.totalorder %s2598_s12, 1 }
  0x21   : > { %v295_v4 = vld [vmem:[%s2693_s5 + $0x1f8] sm:$0xff]  ;;  %2377 = vmatpush.xpose.msk.msra.mxu2 %vm380_vm2, %v279_v3  ;;  %v294_v8 = vld [vmem:[%s2693_s5 + $0x1f0] sm:$0xff]  ;;  %v293_v12 = vld [vmem:[%s2693_s5 + $0x1e8] sm:$0xff]  ;;  %s2624_s12 = smov (!%p2505_p8), 10  }
  0x22   : > { %2397 = vmatpush.xpose.msk.msra.mxu3 %vm380_vm2, %v295_v4  ;;  %v244_v13 = vld [vmem:[%s2693_s5 + $0x60] sm:$0xff]  ;;  %v243_v17 = vld [vmem:[%s2693_s5 + $0x58] sm:$0xff]  ;;  %v242_v21 = vld [vmem:[%s2693_s5 + $0x50] sm:$0xff] }
  0x23   : > { %2338 = vmatpush.xpose.msk.msra.mxu0 %vm380_vm2, %v246_v5  ;;  %v260_v14 = vld [vmem:[%s2693_s5 + $0xe0] sm:$0xff]  ;;  %v259_v18 = vld [vmem:[%s2693_s5 + $0xd8] sm:$0xff]  ;;  %v258_v22 = vld [vmem:[%s2693_s5 + $0xd0] sm:$0xff] }
  0x24   : > { %2358 = vmatpush.xpose.msk.msra.mxu1 %vm380_vm2, %v262_v6  ;;  %v276_v15 = vld [vmem:[%s2693_s5 + $0x160] sm:$0xff]  ;;  %v275_v19 = vld [vmem:[%s2693_s5 + $0x158] sm:$0xff]  ;;  %v274_v23 = vld [vmem:[%s2693_s5 + $0x150] sm:$0xff] }
  0x25   : > { %2378 = vmatpush.xpose.msk.msra.mxu2 %vm380_vm2, %v278_v7  ;;  %v292_v16 = vld [vmem:[%s2693_s5 + $0x1e0] sm:$0xff]  ;;  %v291_v20 = vld [vmem:[%s2693_s5 + $0x1d8] sm:$0xff]  ;;  %v290_v24 = vld [vmem:[%s2693_s5 + $0x1d0] sm:$0xff] }
  0x26   : > { %2398 = vmatpush.xpose.msk.msra.mxu3 %vm380_vm2, %v294_v8  ;;  %v241_v25 = vld [vmem:[%s2693_s5 + $0x48] sm:$0xff]  ;;  %v240_v29 = vld [vmem:[%s2693_s5 + $0x40] sm:$0xff]  ;;  %v239_v33 = vld [vmem:[%s2693_s5 + $0x38] sm:$0xff] }
  0x27   : > { %2339 = vmatpush.xpose.msk.msra.mxu0 %vm380_vm2, %v245_v9  ;;  %v257_v26 = vld [vmem:[%s2693_s5 + $0xc8] sm:$0xff]  ;;  %v256_v30 = vld [vmem:[%s2693_s5 + $0xc0] sm:$0xff]  ;;  %v255_v34 = vld [vmem:[%s2693_s5 + $0xb8] sm:$0xff] }
  0x28   : > { %2359 = vmatpush.xpose.msk.msra.mxu1 %vm380_vm2, %v261_v10  ;;  %v273_v27 = vld [vmem:[%s2693_s5 + $0x148] sm:$0xff]  ;;  %v272_v31 = vld [vmem:[%s2693_s5 + $0x140] sm:$0xff]  ;;  %v271_v35 = vld [vmem:[%s2693_s5 + $0x138] sm:$0xff] }
  0x29   : > { %2379 = vmatpush.xpose.msk.msra.mxu2 %vm380_vm2, %v277_v11  ;;  %v289_v28 = vld [vmem:[%s2693_s5 + $0x1c8] sm:$0xff]  ;;  %v288_v32 = vld [vmem:[%s2693_s5 + $0x1c0] sm:$0xff]  ;;  %v287_v36 = vld [vmem:[%s2693_s5 + $0x1b8] sm:$0xff] }
  0x2a   : > { %2399 = vmatpush.xpose.msk.msra.mxu3 %vm380_vm2, %v293_v12  ;;  %v238_v37 = vld [vmem:[%s2693_s5 + $0x30] sm:$0xff]  ;;  %v237_v41 = vld [vmem:[%s2693_s5 + $0x28] sm:$0xff]  ;;  %v236_v45 = vld [vmem:[%s2693_s5 + $0x20] sm:$0xff] }
  0x2b   : > { %2340 = vmatpush.xpose.msk.msra.mxu0 %vm380_vm2, %v244_v13  ;;  %v254_v38 = vld [vmem:[%s2693_s5 + $0xb0] sm:$0xff]  ;;  %v253_v42 = vld [vmem:[%s2693_s5 + $0xa8] sm:$0xff]  ;;  %v252_v46 = vld [vmem:[%s2693_s5 + $0xa0] sm:$0xff] }
  0x2c   : > { %2360 = vmatpush.xpose.msk.msra.mxu1 %vm380_vm2, %v260_v14  ;;  %v270_v39 = vld [vmem:[%s2693_s5 + $0x130] sm:$0xff]  ;;  %v269_v43 = vld [vmem:[%s2693_s5 + $0x128] sm:$0xff]  ;;  %v268_v47 = vld [vmem:[%s2693_s5 + $0x120] sm:$0xff] }
  0x2d   : > { %2380 = vmatpush.xpose.msk.msra.mxu2 %vm380_vm2, %v276_v15  ;;  %v286_v40 = vld [vmem:[%s2693_s5 + $0x1b0] sm:$0xff]  ;;  %v285_v44 = vld [vmem:[%s2693_s5 + $0x1a8] sm:$0xff]  ;;  %v284_v48 = vld [vmem:[%s2693_s5 + $0x1a0] sm:$0xff] }
  0x2e   : > { %2400 = vmatpush.xpose.msk.msra.mxu3 %vm380_vm2, %v292_v16  ;;  %v235_v49 = vld [vmem:[%s2693_s5 + $0x18] sm:$0xff]  ;;  %v234_v53 = vld [vmem:[%s2693_s5 + $0x10] sm:$0xff]  ;;  %v233_v57 = vld [vmem:[%s2693_s5 + $0x8] sm:$0xff]  ;;  %v2617_v16 = vmov 50  }
  0x2f   : > { %2341 = vmatpush.xpose.msk.msra.mxu0 %vm380_vm2, %v243_v17  ;;  %v251_v50 = vld [vmem:[%s2693_s5 + $0x98] sm:$0xff]  ;;  %v250_v54 = vld [vmem:[%s2693_s5 + $0x90] sm:$0xff]  ;;  %v249_v58 = vld [vmem:[%s2693_s5 + $0x88] sm:$0xff]  ;;  %2562 = vset.pattern.permute.xlu0 %v2617_v16 }
  0x30   : > { %2361 = vmatpush.xpose.msk.msra.mxu1 %vm380_vm2, %v259_v18  ;;  %v267_v51 = vld [vmem:[%s2693_s5 + $0x118] sm:$0xff]  ;;  %v266_v55 = vld [vmem:[%s2693_s5 + $0x110] sm:$0xff]  ;;  %v265_v59 = vld [vmem:[%s2693_s5 + $0x108] sm:$0xff]  ;;  %2563 = vset.pattern.permute.xlu1 %v2617_v16 }
  0x31   : > { %2381 = vmatpush.xpose.msk.msra.mxu2 %vm380_vm2, %v275_v19  ;;  %v283_v52 = vld [vmem:[%s2693_s5 + $0x198] sm:$0xff]  ;;  %v282_v56 = vld [vmem:[%s2693_s5 + $0x190] sm:$0xff]  ;;  %v281_v60 = vld [vmem:[%s2693_s5 + $0x188] sm:$0xff] }
  0x32   : > { %2401 = vmatpush.xpose.msk.msra.mxu3 %vm380_vm2, %v291_v20  ;;  %v232_v61 = vld [vmem:[%s2693_s5] sm:$0xff]  ;;  %v311_v1 = vld [vmem:[%s2693_s5 + $0x278] sm:$0xff]  ;;  %v310_v6 = vld [vmem:[%s2693_s5 + $0x270] sm:$0xff] }
  0x33   : > { %2342 = vmatpush.xpose.msk.msra.mxu0 %vm380_vm2, %v242_v21  ;;  %v248_v62 = vld [vmem:[%s2693_s5 + $0x80] sm:$0xff]  ;;  %v327_v2 = vld [vmem:[%s2693_s5 + $0x2f8] sm:$0xff]  ;;  %v326_v7 = vld [vmem:[%s2693_s5 + $0x2f0] sm:$0xff] }
  0x34   : > { %2362 = vmatpush.xpose.msk.msra.mxu1 %vm380_vm2, %v258_v22  ;;  %v264_v63 = vld [vmem:[%s2693_s5 + $0x100] sm:$0xff]  ;;  %v343_v3 = vld [vmem:[%s2693_s5 + $0x378] sm:$0xff]  ;;  %v342_v8 = vld [vmem:[%s2693_s5 + $0x370] sm:$0xff] }
  0x35   : > { %2382 = vmatpush.xpose.msk.msra.mxu2 %vm380_vm2, %v274_v23  ;;  %v280_v0 = vld [vmem:[%s2693_s5 + $0x180] sm:$0xff]  ;;  %v359_v4 = vld [vmem:[%s2693_s5 + $0x3f8] sm:$0xff]  ;;  %v358_v9 = vld [vmem:[%s2693_s5 + $0x3f0] sm:$0xff] }
  0x36   : > { %2402 = vmatpush.xpose.msk.msra.mxu3 %vm380_vm2, %v290_v24  ;;  %v2831_v5 = vld [vmem:[%s3987_s2] sm:$0xff]  ;;  %v309_v10 = vld [vmem:[%s2693_s5 + $0x268] sm:$0xff]  ;;  %v2865_v15 = vld [vmem:[%s3987_s2 + $0x18] sm:$0xff] }
  0x37   : > { %2343 = vmatpush.xpose.msk.msra.mxu0 %vm380_vm2, %v241_v25  ;;  %v325_v11 = vld [vmem:[%s2693_s5 + $0x2e8] sm:$0xff]  ;;  %377 = vperm.xlu0 %2562, %v2865_v15   ;;  %v308_v17 = vld [vmem:[%s2693_s5 + $0x260] sm:$0xff]  ;;  %v307_v21 = vld [vmem:[%s2693_s5 + $0x258] sm:$0xff] }
  0x38   : > { %2363 = vmatpush.xpose.msk.msra.mxu1 %vm380_vm2, %v257_v26  ;;  %v341_v12 = vld [vmem:[%s2693_s5 + $0x368] sm:$0xff]  ;;  %v324_v18 = vld [vmem:[%s2693_s5 + $0x2e0] sm:$0xff]  ;;  %v323_v22 = vld [vmem:[%s2693_s5 + $0x2d8] sm:$0xff] }
  0x39   : > { %2383 = vmatpush.xpose.msk.msra.mxu2 %vm380_vm2, %v273_v27  ;;  %v357_v13 = vld [vmem:[%s2693_s5 + $0x3e8] sm:$0xff]  ;;  %v340_v19 = vld [vmem:[%s2693_s5 + $0x360] sm:$0xff]  ;;  %v339_v23 = vld [vmem:[%s2693_s5 + $0x358] sm:$0xff] }
  0x3a   : > { %2403 = vmatpush.xpose.msk.msra.mxu3 %vm380_vm2, %v289_v28  ;;  %v2860_v14 = vld [vmem:[%s3987_s2 + $0x8] sm:$0xff]  ;;  %v356_v20 = vld [vmem:[%s2693_s5 + $0x3e0] sm:$0xff]  ;;  %v355_v24 = vld [vmem:[%s2693_s5 + $0x3d8] sm:$0xff] }
  0x3b   : > { %2344 = vmatpush.xpose.msk.msra.mxu0 %vm380_vm2, %v240_v29  ;;  %367 = vperm.xlu1 %2563, %v2860_v14   ;;  %v2896_v25 = vld [vmem:[%s3987_s2 + $0x10] sm:$0xff] }
  0x3c   : > { %2364 = vmatpush.xpose.msk.msra.mxu1 %vm380_vm2, %v256_v30  ;;  %v306_v26 = vld [vmem:[%s2693_s5 + $0x250] sm:$0xff]  ;;  %v305_v30 = vld [vmem:[%s2693_s5 + $0x248] sm:$0xff] }
  0x3d   : > { %2384 = vmatpush.xpose.msk.msra.mxu2 %vm380_vm2, %v272_v31  ;;  %v322_v27 = vld [vmem:[%s2693_s5 + $0x2d0] sm:$0xff]  ;;  %v321_v31 = vld [vmem:[%s2693_s5 + $0x2c8] sm:$0xff] }
  0x3e   : > { %2404 = vmatpush.xpose.msk.msra.mxu3 %vm380_vm2, %v288_v32  ;;  %v338_v28 = vld [vmem:[%s2693_s5 + $0x350] sm:$0xff]  ;;  %v337_v32 = vld [vmem:[%s2693_s5 + $0x348] sm:$0xff] }
  0x3f   : > { %2345 = vmatpush.xpose.msk.msra.mxu0 %vm380_vm2, %v239_v33  ;;  %372 = vperm.xlu0 %2562, %v2896_v25   ;;  %v354_v29 = vld [vmem:[%s2693_s5 + $0x3d0] sm:$0xff]  ;;  %v353_v33 = vld [vmem:[%s2693_s5 + $0x3c8] sm:$0xff] }
  0x40   : > { %2365 = vmatpush.xpose.msk.msra.mxu1 %vm380_vm2, %v255_v34  ;;  %v304_v34 = vld [vmem:[%s2693_s5 + $0x240] sm:$0xff] }
  0x41   : > { %2385 = vmatpush.xpose.msk.msra.mxu2 %vm380_vm2, %v271_v35  ;;  %v320_v35 = vld [vmem:[%s2693_s5 + $0x2c0] sm:$0xff] }
  0x42   : > { %2405 = vmatpush.xpose.msk.msra.mxu3 %vm380_vm2, %v287_v36  ;;  %v336_v36 = vld [vmem:[%s2693_s5 + $0x340] sm:$0xff] }
  0x43   : > { %2346 = vmatpush.xpose.msk.msra.mxu0 %vm380_vm2, %v238_v37  ;;  %362 = vperm.xlu1 %2563, %v2831_v5   ;;  %v352_v37 = vld [vmem:[%s2693_s5 + $0x3c0] sm:$0xff] }
  0x44   : > { %2366 = vmatpush.xpose.msk.msra.mxu1 %vm380_vm2, %v254_v38  ;;  %v303_v38 = vld [vmem:[%s2693_s5 + $0x238] sm:$0xff] }
  0x45   : > { %2386 = vmatpush.xpose.msk.msra.mxu2 %vm380_vm2, %v270_v39  ;;  %v319_v39 = vld [vmem:[%s2693_s5 + $0x2b8] sm:$0xff] }
  0x46   : > { %2406 = vmatpush.xpose.msk.msra.mxu3 %vm380_vm2, %v286_v40  ;;  %v335_v40 = vld [vmem:[%s2693_s5 + $0x338] sm:$0xff] }
  0x47   : > { %2347 = vmatpush.xpose.msk.msra.mxu0 %vm380_vm2, %v237_v41  ;;  %v351_v41 = vld [vmem:[%s2693_s5 + $0x3b8] sm:$0xff] }
  0x48   : > { %2367 = vmatpush.xpose.msk.msra.mxu1 %vm380_vm2, %v253_v42  ;;  %v302_v42 = vld [vmem:[%s2693_s5 + $0x230] sm:$0xff] }
  0x49   : > { %2387 = vmatpush.xpose.msk.msra.mxu2 %vm380_vm2, %v269_v43  ;;  %v318_v43 = vld [vmem:[%s2693_s5 + $0x2b0] sm:$0xff] }
  0x4a   : > { %2407 = vmatpush.xpose.msk.msra.mxu3 %vm380_vm2, %v285_v44  ;;  %v334_v44 = vld [vmem:[%s2693_s5 + $0x330] sm:$0xff] }
  0x4b   : > { %2348 = vmatpush.xpose.msk.msra.mxu0 %vm380_vm2, %v236_v45  ;;  %v350_v45 = vld [vmem:[%s2693_s5 + $0x3b0] sm:$0xff] }
  0x4c   : > { %2368 = vmatpush.xpose.msk.msra.mxu1 %vm380_vm2, %v252_v46  ;;  %v301_v46 = vld [vmem:[%s2693_s5 + $0x228] sm:$0xff] }
  0x4d   : > { %2388 = vmatpush.xpose.msk.msra.mxu2 %vm380_vm2, %v268_v47  ;;  %v317_v47 = vld [vmem:[%s2693_s5 + $0x2a8] sm:$0xff] }
  0x4e   : > { %2408 = vmatpush.xpose.msk.msra.mxu3 %vm380_vm2, %v284_v48  ;;  %v333_v48 = vld [vmem:[%s2693_s5 + $0x328] sm:$0xff] }
  0x4f   : > { %2349 = vmatpush.xpose.msk.msra.mxu0 %vm380_vm2, %v235_v49  ;;  %v349_v49 = vld [vmem:[%s2693_s5 + $0x3a8] sm:$0xff] }
  0x50   : > { %2369 = vmatpush.xpose.msk.msra.mxu1 %vm380_vm2, %v251_v50  ;;  %v300_v50 = vld [vmem:[%s2693_s5 + $0x220] sm:$0xff] }
  0x51   : > { %2389 = vmatpush.xpose.msk.msra.mxu2 %vm380_vm2, %v267_v51  ;;  %v316_v51 = vld [vmem:[%s2693_s5 + $0x2a0] sm:$0xff] }
  0x52   : > { %2409 = vmatpush.xpose.msk.msra.mxu3 %vm380_vm2, %v283_v52  ;;  %v332_v52 = vld [vmem:[%s2693_s5 + $0x320] sm:$0xff] }
  0x53   : > { %2350 = vmatpush.xpose.msk.msra.mxu0 %vm380_vm2, %v234_v53  ;;  %v348_v53 = vld [vmem:[%s2693_s5 + $0x3a0] sm:$0xff] }
  0x54   : > { %2370 = vmatpush.xpose.msk.msra.mxu1 %vm380_vm2, %v250_v54  ;;  %v299_v54 = vld [vmem:[%s2693_s5 + $0x218] sm:$0xff] }
  0x55   : > { %2390 = vmatpush.xpose.msk.msra.mxu2 %vm380_vm2, %v266_v55  ;;  %v315_v55 = vld [vmem:[%s2693_s5 + $0x298] sm:$0xff] }
  0x56   : > { %2410 = vmatpush.xpose.msk.msra.mxu3 %vm380_vm2, %v282_v56  ;;  %v331_v56 = vld [vmem:[%s2693_s5 + $0x318] sm:$0xff] }
  0x57   : > { %2351 = vmatpush.xpose.msk.msra.mxu0 %vm380_vm2, %v233_v57  ;;  %v347_v57 = vld [vmem:[%s2693_s5 + $0x398] sm:$0xff] }
  0x58   : > { %2371 = vmatpush.xpose.msk.msra.mxu1 %vm380_vm2, %v249_v58  ;;  %v298_v58 = vld [vmem:[%s2693_s5 + $0x210] sm:$0xff] }
  0x59   : > { %2391 = vmatpush.xpose.msk.msra.mxu2 %vm380_vm2, %v265_v59  ;;  %v314_v59 = vld [vmem:[%s2693_s5 + $0x290] sm:$0xff] }
  0x5a   : > { %2411 = vmatpush.xpose.msk.msra.mxu3 %vm380_vm2, %v281_v60  ;;  %v330_v60 = vld [vmem:[%s2693_s5 + $0x310] sm:$0xff] }
  0x5b   : > { %2352 = vmatpush.xpose.msk.msra.mxu0 %vm380_vm2, %v232_v61  ;;  %v346_v61 = vld [vmem:[%s2693_s5 + $0x390] sm:$0xff] }
  0x5c   : > { %2372 = vmatpush.xpose.msk.msra.mxu1 %vm380_vm2, %v248_v62  ;;  %v297_v62 = vld [vmem:[%s2693_s5 + $0x208] sm:$0xff] }
  0x5d   : > { %2392 = vmatpush.xpose.msk.msra.mxu2 %vm380_vm2, %v264_v63  ;;  %v313_v63 = vld [vmem:[%s2693_s5 + $0x288] sm:$0xff] }
  0x5e   : > { %2412 = vmatpush.xpose.msk.msra.mxu3 %vm380_vm2, %v280_v0  ;;  %2353 = vmatmul.msk.f32.vlgmr.msra.gmra.mxu0 %vm380_vm2, %v2831_v5  ;;  %v329_v0 = vld [vmem:[%s2693_s5 + $0x308] sm:$0xff] }
  0x5f   : > { %2417 = vmatpush.xpose.msk.msrb.mxu0 %vm380_vm2, %v311_v1  ;;  %2373 = vmatmul.msk.f32.vlgmr.msra.gmra.mxu1 %vm380_vm2, %v2831_v5  ;;  %v345_v1 = vld [vmem:[%s2693_s5 + $0x388] sm:$0xff] }
  0x60   : > { %2437 = vmatpush.xpose.msk.msrb.mxu1 %vm380_vm2, %v327_v2  ;;  %2393 = vmatmul.msk.f32.vlgmr.msra.gmra.mxu2 %vm380_vm2, %v2831_v5  ;;  %v296_v2 = vld [vmem:[%s2693_s5 + $0x200] sm:$0xff] }
  0x61   : > { %2457 = vmatpush.xpose.msk.msrb.mxu2 %vm380_vm2, %v343_v3  ;;  %2413 = vmatmul.msk.f32.vlgmr.msra.gmra.mxu3 %vm380_vm2, %v2831_v5  ;;  %v312_v3 = vld [vmem:[%s2693_s5 + $0x280] sm:$0xff] }
  0x62   : > { %2477 = vmatpush.xpose.msk.msrb.mxu3 %vm380_vm2, %v359_v4  ;;  %v328_v4 = vld [vmem:[%s2693_s5 + $0x300] sm:$0xff] }
  0x63   : > { %2418 = vmatpush.xpose.msk.msrb.mxu0 %vm380_vm2, %v310_v6  ;;  %v344_v6 = vld [vmem:[%s2693_s5 + $0x380] sm:$0xff] }
  0x64   : > { %2438 = vmatpush.xpose.msk.msrb.mxu1 %vm380_vm2, %v326_v7 }
  0x65   : > { %2458 = vmatpush.xpose.msk.msrb.mxu2 %vm380_vm2, %v342_v8 }
  0x66   : > { %2478 = vmatpush.xpose.msk.msrb.mxu3 %vm380_vm2, %v358_v9  ;;  %2354 = vmatmul.msk.f32.gmra.mxu0 %vm380_vm2, %v2860_v14 }
  0x67   : > { %2419 = vmatpush.xpose.msk.msrb.mxu0 %vm380_vm2, %v309_v10  ;;  %2374 = vmatmul.msk.f32.gmra.mxu1 %vm380_vm2, %v2860_v14 }
  0x68   : > { %2439 = vmatpush.xpose.msk.msrb.mxu1 %vm380_vm2, %v325_v11  ;;  %2394 = vmatmul.msk.f32.gmra.mxu2 %vm380_vm2, %v2860_v14 }
  0x69   : > { %2459 = vmatpush.xpose.msk.msrb.mxu2 %vm380_vm2, %v341_v12  ;;  %2414 = vmatmul.msk.f32.gmra.mxu3 %vm380_vm2, %v2860_v14 }
  0x6a   : > { %2479 = vmatpush.xpose.msk.msrb.mxu3 %vm380_vm2, %v357_v13 }
  0x6b   : > { %2420 = vmatpush.xpose.msk.msrb.mxu0 %vm380_vm2, %v308_v17 }
  0x6c   : > { %2440 = vmatpush.xpose.msk.msrb.mxu1 %vm380_vm2, %v324_v18 }
  0x6d   : > { %2460 = vmatpush.xpose.msk.msrb.mxu2 %vm380_vm2, %v340_v19 }
  0x6e   : > { %2480 = vmatpush.xpose.msk.msrb.mxu3 %vm380_vm2, %v356_v20  ;;  %2355 = vmatmul.msk.f32.gmra.mxu0 %vm380_vm2, %v2896_v25 }
  0x6f   : > { %2421 = vmatpush.xpose.msk.msrb.mxu0 %vm380_vm2, %v307_v21  ;;  %2375 = vmatmul.msk.f32.gmra.mxu1 %vm380_vm2, %v2896_v25 }
  0x70   : > { %2441 = vmatpush.xpose.msk.msrb.mxu1 %vm380_vm2, %v323_v22  ;;  %2395 = vmatmul.msk.f32.gmra.mxu2 %vm380_vm2, %v2896_v25 }
  0x71   : > { %2461 = vmatpush.xpose.msk.msrb.mxu2 %vm380_vm2, %v339_v23  ;;  %2415 = vmatmul.msk.f32.gmra.mxu3 %vm380_vm2, %v2896_v25 }
  0x72   : > { %2481 = vmatpush.xpose.msk.msrb.mxu3 %vm380_vm2, %v355_v24 }
  0x73   : > { %2422 = vmatpush.xpose.msk.msrb.mxu0 %vm380_vm2, %v306_v26 }
  0x74   : > { %2442 = vmatpush.xpose.msk.msrb.mxu1 %vm380_vm2, %v322_v27 }
  0x75   : > { %2462 = vmatpush.xpose.msk.msrb.mxu2 %vm380_vm2, %v338_v28 }
  0x76   : > { %2482 = vmatpush.xpose.msk.msrb.mxu3 %vm380_vm2, %v354_v29  ;;  %2356 = vmatmul.msk.f32.gmra.mxu0 %vm380_vm2, %v2865_v15 }
  0x77   : > { %2423 = vmatpush.xpose.msk.msrb.mxu0 %vm380_vm2, %v305_v30  ;;  %2376 = vmatmul.msk.f32.gmra.mxu1 %vm380_vm2, %v2865_v15 }
  0x78   : > { %2443 = vmatpush.xpose.msk.msrb.mxu1 %vm380_vm2, %v321_v31  ;;  %2396 = vmatmul.msk.f32.gmra.mxu2 %vm380_vm2, %v2865_v15 }
  0x79   : > { %2463 = vmatpush.xpose.msk.msrb.mxu2 %vm380_vm2, %v337_v32  ;;  %2416 = vmatmul.msk.f32.gmra.mxu3 %vm380_vm2, %v2865_v15 }
  0x7a   : > { %2483 = vmatpush.xpose.msk.msrb.mxu3 %vm380_vm2, %v353_v33 }
  0x7b   : > { %2424 = vmatpush.xpose.msk.msrb.mxu0 %vm380_vm2, %v304_v34 }
  0x7c   : > { %2444 = vmatpush.xpose.msk.msrb.mxu1 %vm380_vm2, %v320_v35 }
  0x7d   : > { %2464 = vmatpush.xpose.msk.msrb.mxu2 %vm380_vm2, %v336_v36 }
  0x7e   : > { %2484 = vmatpush.xpose.msk.msrb.mxu3 %vm380_vm2, %v352_v37 }
  0x7f   : > { %2425 = vmatpush.xpose.msk.msrb.mxu0 %vm380_vm2, %v303_v38 }
  0x80   : > { %2445 = vmatpush.xpose.msk.msrb.mxu1 %vm380_vm2, %v319_v39 }
  0x81   : > { %2465 = vmatpush.xpose.msk.msrb.mxu2 %vm380_vm2, %v335_v40 }
  0x82   : > { %2485 = vmatpush.xpose.msk.msrb.mxu3 %vm380_vm2, %v351_v41 }
  0x83   : > { %2426 = vmatpush.xpose.msk.msrb.mxu0 %vm380_vm2, %v302_v42 }
  0x84   : > { %2446 = vmatpush.xpose.msk.msrb.mxu1 %vm380_vm2, %v318_v43 }
  0x85   : > { %2466 = vmatpush.xpose.msk.msrb.mxu2 %vm380_vm2, %v334_v44 }
  0x86   : > { %2486 = vmatpush.xpose.msk.msrb.mxu3 %vm380_vm2, %v350_v45 }
  0x87   : > { %2427 = vmatpush.xpose.msk.msrb.mxu0 %vm380_vm2, %v301_v46 }
  0x88   : > { %2447 = vmatpush.xpose.msk.msrb.mxu1 %vm380_vm2, %v317_v47 }
  0x89   : > { %2467 = vmatpush.xpose.msk.msrb.mxu2 %vm380_vm2, %v333_v48 }
  0x8a   : > { %2487 = vmatpush.xpose.msk.msrb.mxu3 %vm380_vm2, %v349_v49 }
  0x8b   : > { %2428 = vmatpush.xpose.msk.msrb.mxu0 %vm380_vm2, %v300_v50 }
  0x8c   : > { %2448 = vmatpush.xpose.msk.msrb.mxu1 %vm380_vm2, %v316_v51 }
  0x8d   : > { %2468 = vmatpush.xpose.msk.msrb.mxu2 %vm380_vm2, %v332_v52 }
  0x8e   : > { %2488 = vmatpush.xpose.msk.msrb.mxu3 %vm380_vm2, %v348_v53 }
  0x8f   : > { %2429 = vmatpush.xpose.msk.msrb.mxu0 %vm380_vm2, %v299_v54 }
  0x90   : > { %2449 = vmatpush.xpose.msk.msrb.mxu1 %vm380_vm2, %v315_v55 }
  0x91   : > { %2469 = vmatpush.xpose.msk.msrb.mxu2 %vm380_vm2, %v331_v56 }
  0x92   : > { %2489 = vmatpush.xpose.msk.msrb.mxu3 %vm380_vm2, %v347_v57 }
  0x93   : > { %2430 = vmatpush.xpose.msk.msrb.mxu0 %vm380_vm2, %v298_v58  ;;  %v3067_v58 = vld [vmem:[%s3987_s2 + $0x20] sm:$0xff] }
  0x94   : > { %2450 = vmatpush.xpose.msk.msrb.mxu1 %vm380_vm2, %v314_v59 }
  0x95   : > { %2470 = vmatpush.xpose.msk.msrb.mxu2 %vm380_vm2, %v330_v60 }
  0x96   : > { %2490 = vmatpush.xpose.msk.msrb.mxu3 %vm380_vm2, %v346_v61 }
  0x97   : > { %2431 = vmatpush.xpose.msk.msrb.mxu0 %vm380_vm2, %v297_v62 }
  0x98   : > { %2451 = vmatpush.xpose.msk.msrb.mxu1 %vm380_vm2, %v313_v63 }
  0x99   : > { %2471 = vmatpush.xpose.msk.msrb.mxu2 %vm380_vm2, %v329_v0 }
  0x9a   : > { %2491 = vmatpush.xpose.msk.msrb.mxu3 %vm380_vm2, %v345_v1  ;;  %v231_v1 = vld [vmem:[%s3987_s2 + $0x28] sm:$0x1] }
  0x9b   : > { %2432 = vmatpush.xpose.msk.msrb.mxu0 %vm380_vm2, %v296_v2  ;;  %v2618_v2 = vmov 0  }
  0x9c   : > { %2452 = vmatpush.xpose.msk.msrb.mxu1 %vm380_vm2, %v312_v3  ;;  %2566 = vset.pattern.permute.xlu0 %v2618_v2  ;;  %v2619_v3 = vmov 32   ;;  %v3149_v2 = vld [vmem:[%s2688_s29 + $0x30] sm:$0xff] }
  0x9d   : > { %2472 = vmatpush.xpose.msk.msrb.mxu2 %vm380_vm2, %v328_v4  ;;  %2564 = vset.pattern.permute.xlu2 %v2619_v3 }
  0x9e   : > { %2492 = vmatpush.xpose.msk.msrb.mxu3 %vm380_vm2, %v344_v6  ;;  %2433 = vmatmul.msk.f32.vlgmr.msrb.gmra.mxu0 %vm380_vm2, %v2831_v5 }
  0x9f   : > { %2453 = vmatmul.msk.f32.vlgmr.msrb.gmra.mxu1 %vm380_vm2, %v2831_v5  ;;  %1275 = vperm.xlu0 %2566, %v231_v1  }
  0xa0   : > { %2473 = vmatmul.msk.f32.vlgmr.msrb.gmra.mxu2 %vm380_vm2, %v2831_v5  ;;  %1039 = vperm.xlu2 %2564, %v3067_v58  }
  0xa1   : > { %2493 = vmatmul.msk.f32.vlgmr.msrb.gmra.mxu3 %vm380_vm2, %v2831_v5 }
  0xa6   : > { %2434 = vmatmul.msk.f32.gmra.mxu0 %vm380_vm2, %v2860_v14 }
  0xa7   : > { %2454 = vmatmul.msk.f32.gmra.mxu1 %vm380_vm2, %v2860_v14 }
  0xa8   : > { %2474 = vmatmul.msk.f32.gmra.mxu2 %vm380_vm2, %v2860_v14 }
  0xa9   : > { %2494 = vmatmul.msk.f32.gmra.mxu3 %vm380_vm2, %v2860_v14  ;;  %v3040_v12 = vpop.permute.xlu0 %377 }
  0xad   : > { %v3042_v16 = vpop.permute.xlu1 %367 }
  0xae   : > { %2435 = vmatmul.msk.f32.gmra.mxu0 %vm380_vm2, %v2896_v25 }
  0xaf   : > { %2455 = vmatmul.msk.f32.gmra.mxu1 %vm380_vm2, %v2896_v25 }
  0xb0   : > { %2475 = vmatmul.msk.f32.gmra.mxu2 %vm380_vm2, %v2896_v25 }
  0xb1   : > { %2495 = vmatmul.msk.f32.gmra.mxu3 %vm380_vm2, %v2896_v25  ;;  %v3044_v21 = vpop.permute.xlu0 %372 }
  0xb5   : > { %v3048_v25 = vpop.permute.xlu1 %362 }
  0xb6   : > { %2436 = vmatmul.msk.f32.gmra.mxu0 %vm380_vm2, %v2865_v15 }
  0xb7   : > { %2456 = vmatmul.msk.f32.gmra.mxu1 %vm380_vm2, %v2865_v15 }
  0xb8   : > { %2476 = vmatmul.msk.f32.gmra.mxu2 %vm380_vm2, %v2865_v15 }
  0xb9   : > { %2496 = vmatmul.msk.f32.gmra.mxu3 %vm380_vm2, %v2865_v15 }
  0xdb   : > { %v790_v5 = vpop.f32.mrf.mxu0 }
  0xdc   : > { %v819_v7 = vpop.f32.mrf.mxu1  ;;  %v791_v30 = vadd.f32 %v790_v5, %v3048_v25 }
  0xdd   : > { %v820_v31 = vadd.f32 %v819_v7, %v3048_v25 }
  0xde   : > { %v1005_v48 = vmax.f32 %v791_v30, 0.0 }
  0xdf   : > { %v1006_v49 = vmax.f32 %v820_v31, 0.0 }
  0xe3   : > { %v848_v8 = vpop.f32.mrf.mxu2  ;;  %v793_v10 = vpop.f32.mrf.mxu0 }
  0xe4   : > { %v877_v9 = vpop.f32.mrf.mxu3  ;;  %v822_v11 = vpop.f32.mrf.mxu1  ;;  %v794_v28 = vadd.f32 %v793_v10, %v3042_v16  ;;  %v849_v46 = vadd.f32 %v848_v8, %v3048_v25  ;;  %v2620_v8 = vmov 33  }
  0xe5   : > { %v823_v29 = vadd.f32 %v822_v11, %v3042_v16  ;;  %v878_v47 = vadd.f32 %v877_v9, %v3048_v25  ;;  %2565 = vset.pattern.permute.xlu2 %v2620_v8 }
  0xe6   : > { %v1013_v40 = vmax.f32 %v794_v28, 0.0  ;;  %v1007_v56 = vmax.f32 %v849_v46, 0.0  ;;  %1214 = vperm.xlu2 %2565, %v3067_v58  }
  0xe7   : > { %v1014_v41 = vmax.f32 %v823_v29, 0.0  ;;  %v1008_v57 = vmax.f32 %v878_v47, 0.0 }
  0xeb   : > { %v851_v13 = vpop.f32.mrf.mxu2  ;;  %v796_v17 = vpop.f32.mrf.mxu0 }
  0xec   : > { %v880_v14 = vpop.f32.mrf.mxu3  ;;  %v825_v18 = vpop.f32.mrf.mxu1  ;;  %v797_v15 = vadd.f32 %v796_v17, %v3044_v21  ;;  %v852_v44 = vadd.f32 %v851_v13, %v3042_v16 }
  0xed   : > { %v826_v22 = vadd.f32 %v825_v18, %v3044_v21  ;;  %v881_v45 = vadd.f32 %v880_v14, %v3042_v16 }
  0xee   : > { %v1021_v34 = vmax.f32 %v797_v15, 0.0  ;;  %v1015_v54 = vmax.f32 %v852_v44, 0.0  ;;  %v3111_v44 = vld [vmem:[%s2688_s29 + $0x18] sm:$0xff] }
  0xef   : > { %v1022_v35 = vmax.f32 %v826_v22, 0.0  ;;  %v1016_v55 = vmax.f32 %v881_v45, 0.0  ;;  %v3114_v45 = vld [vmem:[%s2688_s29 + $0x10] sm:$0xff] }
  0xf0   : > { %v1747_v47 = vmul.f32 %v3114_v45, %v3114_v45 }
  0xf3   : > { %v854_v19 = vpop.f32.mrf.mxu2  ;;  %v799_v23 = vpop.f32.mrf.mxu0 }
  0xf4   : > { %v883_v20 = vpop.f32.mrf.mxu3  ;;  %v828_v24 = vpop.f32.mrf.mxu1  ;;  %v800_v26 = vadd.f32 %v799_v23, %v3040_v12  ;;  %v855_v36 = vadd.f32 %v854_v19, %v3044_v21 }
  0xf5   : > { %v829_v27 = vadd.f32 %v828_v24, %v3040_v12  ;;  %v884_v37 = vadd.f32 %v883_v20, %v3044_v21 }
  0xf6   : > { %v1029_v32 = vmax.f32 %v800_v26, 0.0  ;;  %v1023_v52 = vmax.f32 %v855_v36, 0.0  ;;  %v3097_v36 = vld [vmem:[%s2688_s29 + $0x8] sm:$0xff] }
  0xf7   : > { %v1030_v33 = vmax.f32 %v829_v27, 0.0  ;;  %v1024_v53 = vmax.f32 %v884_v37, 0.0  ;;  %v3100_v37 = vld [vmem:[%s2688_s29] sm:$0xff] }
  0xf8   : > { %1057 = vmatpush.msra.mxu0 %v1029_v32 }
  0xf9   : > { %1077 = vmatpush.msra.mxu1 %v1030_v33 }
  0xfa   : > { %1058 = vmatpush.msra.mxu0 %v1021_v34 }
  0xfb   : > { %v857_v38 = vpop.f32.mrf.mxu2  ;;  %1078 = vmatpush.msra.mxu1 %v1022_v35 }
  0xfc   : > { %v886_v39 = vpop.f32.mrf.mxu3  ;;  %v858_v42 = vadd.f32 %v857_v38, %v3040_v12  ;;  %1059 = vmatpush.msra.mxu0 %v1013_v40  ;;  %v1745_v40 = vmul.f32 %v3100_v37, %v3100_v37 }
  0xfd   : > { %v887_v43 = vadd.f32 %v886_v39, %v3040_v12  ;;  %1079 = vmatpush.msra.mxu1 %v1014_v41 }
  0xfe   : > { %v1031_v50 = vmax.f32 %v858_v42, 0.0  ;;  %1060 = vmatpush.msra.mxu0 %v1005_v48  ;;  %v1874_v48 = vsel %vm1873_vm4, %v1745_v40, 0.0  ;;  %v3223_v40 = vld [vmem:[%s2688_s29 + $0x1e0] sm:$0xff] }
  0xff   : > { %v1032_v51 = vmax.f32 %v887_v43, 0.0  ;;  %1080 = vmatpush.msra.mxu1 %v1006_v49  ;;  %2497 = vmatmul.msk.f32.vlgmr.msra.gmra.mxu0 %vm1042_vm3, %v3067_v58 }
 0x100   : > { %1097 = vmatpush.msra.mxu2 %v1031_v50  ;;  %2498 = vmatmul.msk.f32.vlgmr.msra.gmra.mxu1 %vm1042_vm3, %v3067_v58 }
 0x101   : > { %1117 = vmatpush.msra.mxu3 %v1032_v51  ;;  %v3124_v51 = vld [vmem:[%s2688_s29 + $0x20] sm:$0xff] }
 0x102   : > { %1098 = vmatpush.msra.mxu2 %v1023_v52 }
 0x103   : > { %1118 = vmatpush.msra.mxu3 %v1024_v53 }
 0x104   : > { %1099 = vmatpush.msra.mxu2 %v1015_v54  ;;  %v3128_v54 = vld [vmem:[%s2688_s29 + $0xf8] sm:$0xff] }
 0x105   : > { %1119 = vmatpush.msra.mxu3 %v1016_v55  ;;  %v1748_v55 = vmul.f32 %v3111_v44, %v3111_v44 }
 0x106   : > { %1100 = vmatpush.msra.mxu2 %v1007_v56 }
 0x107   : > { %1120 = vmatpush.msra.mxu3 %v1008_v57  ;;  %2499 = vmatmul.msk.f32.vlgmr.msra.gmra.mxu2 %vm1042_vm3, %v3067_v58 }
 0x108   : > { %2500 = vmatmul.msk.f32.vlgmr.msra.gmra.mxu3 %vm1042_vm3, %v3067_v58 }
 0x11b   : > { %v906_v59 = vpop.f32.mrf.mxu0 }
 0x11c   : > { %v935_v60 = vpop.f32.mrf.mxu1  ;;  %v907_v20 = vadd.f32 %v906_v59, %v3048_v25  ;;  %v3138_v59 = vld [vmem:[%s2688_s29 + $0x28] sm:$0xff] }
 0x11d   : > { %v936_v26 = vadd.f32 %v935_v60, %v3048_v25 }
 0x11e   : > { %v1009_v29 = vmax.f32 %v907_v20, 0.0  ;;  %v1303_v20 = vld [vmem:[%s2688_s29 + $0x40] sm:$0xff] }
 0x11f   : > { %v1010_v41 = vmax.f32 %v936_v26, 0.0  ;;  %v1307_v26 = vld [vmem:[%s2688_s29 + $0x60] sm:$0xff] }
 0x123   : > { %v3077_v61 = vpop.f32.mrf.mxu2  ;;  %v909_v63 = vpop.f32.mrf.mxu0 }
 0x124   : > { %v3079_v62 = vpop.f32.mrf.mxu3  ;;  %v938_v0 = vpop.f32.mrf.mxu1  ;;  %v910_v15 = vadd.f32 %v909_v63, %v3042_v16  ;;  %v965_v49 = vadd.f32 %v3077_v61, %v3048_v25  ;;  %v3141_v61 = vld [vmem:[%s2688_s29 + $0x78] sm:$0xff] }
 0x125   : > { %v939_v22 = vadd.f32 %v938_v0, %v3042_v16  ;;  %v1879_v0 = vsel %vm1873_vm4, %v1748_v55, 0.0 }
 0x126   : > { %v1017_v30 = vmax.f32 %v910_v15, 0.0  ;;  %v1011_v1 = vmax.f32 %v965_v49, 0.0  ;;  %v3188_v15 = vld [vmem:[%s2688_s29 + $0x170] sm:$0xff] }
 0x127   : > { %v1018_v31 = vmax.f32 %v939_v22, 0.0  ;;  %v3191_v22 = vld [vmem:[%s2688_s29 + $0x1f0] sm:$0xff] }
 0x12b   : > { %v967_v4 = vpop.f32.mrf.mxu2  ;;  %v912_v5 = vpop.f32.mrf.mxu0 }
 0x12c   : > { %v996_v6 = vpop.f32.mrf.mxu3  ;;  %v941_v7 = vpop.f32.mrf.mxu1  ;;  %v913_v14 = vadd.f32 %v912_v5, %v3044_v21  ;;  %v968_v42 = vadd.f32 %v967_v4, %v3042_v16  ;;  %v3152_v4 = vld [vmem:[%s2688_s29 + $0x70] sm:$0xff]  ;;  %v1750_v5 = vmul.f32 %v3138_v59, %v3138_v59 }
 0x12d   : > { %v942_v17 = vadd.f32 %v941_v7, %v3044_v21  ;;  %v997_v43 = vadd.f32 %v996_v6, %v3042_v16  ;;  %v994_v16 = vadd.f32 %v3079_v62, %v3048_v25  ;;  %v1877_v25 = vsel %vm1873_vm4, %v1747_v47, 0.0  ;;  %v3155_v6 = vld [vmem:[%s2688_s29 + $0xf0] sm:$0xff] }
 0x12e   : > { %v1025_v27 = vmax.f32 %v913_v14, 0.0  ;;  %v1019_v57 = vmax.f32 %v968_v42, 0.0  ;;  %v1749_v62 = vmul.f32 %v3124_v51, %v3124_v51 }
 0x12f   : > { %v1026_v28 = vmax.f32 %v942_v17, 0.0  ;;  %v1020_v60 = vmax.f32 %v997_v43, 0.0  ;;  %v1012_v3 = vmax.f32 %v994_v16, 0.0  ;;  %v1883_v17 = vsel %vm1873_vm4, %v1750_v5, 0.0  ;;  %v3227_v43 = vld [vmem:[%s2688_s29 + $0xd0] sm:$0xff]  ;;  %v3240_v16 = vld [vmem:[%s2688_s29 + $0xc8] sm:$0xff] }
 0x130   : > { %v1881_v8 = vsel %vm1873_vm4, %v1749_v62, 0.0 }
 0x133   : > { %v970_v9 = vpop.f32.mrf.mxu2  ;;  %v915_v11 = vpop.f32.mrf.mxu0 }
 0x134   : > { %v999_v10 = vpop.f32.mrf.mxu3  ;;  %v944_v13 = vpop.f32.mrf.mxu1  ;;  %v916_v18 = vadd.f32 %v915_v11, %v3040_v12  ;;  %v971_v32 = vadd.f32 %v970_v9, %v3044_v21  ;;  %v3163_v9 = vld [vmem:[%s2688_s29 + $0x38] sm:$0xff] }
 0x135   : > { %v945_v19 = vadd.f32 %v944_v13, %v3040_v12  ;;  %v1000_v33 = vadd.f32 %v999_v10, %v3044_v21  ;;  %v1746_v21 = vmul.f32 %v3097_v36, %v3097_v36  ;;  %v3166_v10 = vld [vmem:[%s2688_s29 + $0x178] sm:$0xff]  ;;  %v1751_v13 = vmul.f32 %v3149_v2, %v3149_v2 }
 0x136   : > { %v1033_v23 = vmax.f32 %v916_v18, 0.0  ;;  %v1027_v50 = vmax.f32 %v971_v32, 0.0  ;;  %v3169_v11 = vld [vmem:[%s2688_s29 + $0x1f8] sm:$0xff]  ;;  %v3179_v18 = vld [vmem:[%s2688_s29 + $0x68] sm:$0xff] }
 0x137   : > { %v1034_v24 = vmax.f32 %v945_v19, 0.0  ;;  %v1875_v52 = vsel %vm1873_vm4, %v1746_v21, 0.0  ;;  %v1028_v53 = vmax.f32 %v1000_v33, 0.0  ;;  %v3182_v19 = vld [vmem:[%s2688_s29 + $0xe8] sm:$0xff] }
 0x138   : > { %1137 = vmatpush.msrb.mxu0 %v1033_v23  ;;  %v1876_v56 = vadd.f32 %v1875_v52, %v1874_v48  ;;  %v1752_v23 = vmul.f32 %v3163_v9, %v3163_v9  ;;  %v3249_v52 = vld [vmem:[%s2688_s29 + $0x1d0] sm:$0xff] }
 0x139   : > { %1157 = vmatpush.msrb.mxu1 %v1034_v24  ;;  %v1885_v24 = vsel %vm1873_vm4, %v1751_v13, 0.0 }
 0x13a   : > { %1138 = vmatpush.msrb.mxu0 %v1025_v27  ;;  %v1878_v63 = vadd.f32 %v1877_v25, %v1876_v56  ;;  %v3198_v27 = vld [vmem:[%s2688_s29 + $0xe0] sm:$0xff]  ;;  %v1887_v33 = vsel %vm1873_vm4, %v1752_v23, 0.0 }
 0x13b   : > { %v973_v34 = vpop.f32.mrf.mxu2  ;;  %1158 = vmatpush.msrb.mxu1 %v1026_v28  ;;  %v1304_v28 = vld [vmem:[%s2688_s29 + $0x48] sm:$0xff]  ;;  %v3253_v25 = vld [vmem:[%s2688_s29 + $0xc0] sm:$0xff] }
 0x13c   : > { %v1002_v35 = vpop.f32.mrf.mxu3  ;;  %v974_v38 = vadd.f32 %v973_v34, %v3040_v12  ;;  %1139 = vmatpush.msrb.mxu0 %v1017_v30  ;;  %v1880_v7 = vadd.f32 %v1879_v0, %v1878_v63  ;;  %v3208_v30 = vld [vmem:[%s2688_s29 + $0x1e8] sm:$0xff]  ;;  %v1306_v34 = vld [vmem:[%s2688_s29 + $0x58] sm:$0xff]  ;;  %v1754_v21 = vmul.f32 %v1304_v28, %v1304_v28  ;;  %v1315_v23 = vld [vmem:[%s2688_s29 + $0xa0] sm:$0xff] }
 0x13d   : > { %v1003_v39 = vadd.f32 %v1002_v35, %v3040_v12  ;;  %1159 = vmatpush.msrb.mxu1 %v1018_v31  ;;  %v1753_v31 = vmul.f32 %v1303_v20, %v1303_v20  ;;  %v3213_v35 = vld [vmem:[%s2688_s29 + $0xd8] sm:$0xff] }
 0x13e   : > { %v1035_v12 = vmax.f32 %v974_v38, 0.0  ;;  %1140 = vmatpush.msrb.mxu0 %v1009_v29  ;;  %v1882_v14 = vadd.f32 %v1881_v8, %v1880_v7  ;;  %v3205_v29 = vld [vmem:[%s2688_s29 + $0x168] sm:$0xff]  ;;  %v1305_v38 = vld [vmem:[%s2688_s29 + $0x50] sm:$0xff]  ;;  %v1891_v49 = vsel %vm1873_vm4, %v1754_v21, 0.0  ;;  %v3263_v0 = vld [vmem:[%s2688_s29 + $0xb8] sm:$0xff] }
 0x13f   : > { %v1036_v46 = vmax.f32 %v1003_v39, 0.0  ;;  %1160 = vmatpush.msrb.mxu1 %v1010_v41  ;;  %2501 = vmatmul.msk.f32.vlgmr.msrb.gmra.mxu0 %vm1042_vm3, %v3067_v58  ;;  %v3220_v39 = vld [vmem:[%s2688_s29 + $0x160] sm:$0xff]  ;;  %v1889_v42 = vsel %vm1873_vm4, %v1753_v31, 0.0  ;;  %v1755_v47 = vmul.f32 %v1305_v38, %v1305_v38  ;;  %v1317_v8 = vld [vmem:[%s2688_s29 + $0xb0] sm:$0xff]  ;;  %v1312_v31 = vld [vmem:[%s2688_s29 + $0x88] sm:$0xff] }
 0x140   : > { %1177 = vmatpush.msrb.mxu2 %v1035_v12  ;;  %2502 = vmatmul.msk.f32.vlgmr.msrb.gmra.mxu1 %vm1042_vm3, %v3067_v58  ;;  %v3233_v12 = vld [vmem:[%s2688_s29 + $0x158] sm:$0xff] }
 0x141   : > { %1197 = vmatpush.msrb.mxu3 %v1036_v46  ;;  %1423 = vmatpush.msra.mxu0 %v3141_v61  ;;  %v3236_v46 = vld [vmem:[%s2688_s29 + $0x1d8] sm:$0xff]  ;;  %v1893_v56 = vsel %vm1873_vm4, %v1755_v47, 0.0 }
 0x142   : > { %1178 = vmatpush.msrb.mxu2 %v1027_v50  ;;  %1443 = vmatpush.msra.mxu1 %v3128_v54  ;;  %v3246_v50 = vld [vmem:[%s2688_s29 + $0x150] sm:$0xff] }
 0x143   : > { %1198 = vmatpush.msrb.mxu3 %v1028_v53  ;;  %1424 = vmatpush.msra.mxu0 %v3152_v4  ;;  %v1756_v53 = vmul.f32 %v1306_v34, %v1306_v34 }
 0x144   : > { %1179 = vmatpush.msrb.mxu2 %v1019_v57  ;;  %1444 = vmatpush.msra.mxu1 %v3155_v6  ;;  %v3259_v57 = vld [vmem:[%s2688_s29 + $0x1c8] sm:$0xff] }
 0x145   : > { %1199 = vmatpush.msrb.mxu3 %v1020_v60  ;;  %1425 = vmatpush.msra.mxu0 %v3179_v18  ;;  %v1757_v60 = vmul.f32 %v1307_v26, %v1307_v26  ;;  %v1895_v63 = vsel %vm1873_vm4, %v1756_v53, 0.0 }
 0x146   : > { %1180 = vmatpush.msrb.mxu2 %v1011_v1  ;;  %1445 = vmatpush.msra.mxu1 %v3182_v19  ;;  %v3270_v1 = vld [vmem:[%s2688_s29 + $0x148] sm:$0xff] }
 0x147   : > { %1200 = vmatpush.msrb.mxu3 %v1012_v3  ;;  %2503 = vmatmul.msk.f32.vlgmr.msrb.gmra.mxu2 %vm1042_vm3, %v3067_v58  ;;  %v1758_v3 = vmul.f32 %v3179_v18, %v3179_v18  ;;  %v1897_v7 = vsel %vm1873_vm4, %v1757_v60, 0.0  ;;  %v1760_v18 = vmul.f32 %v3141_v61, %v3141_v61  ;;  %v1767_v60 = vmul.f32 %v1317_v8, %v1317_v8 }
 0x148   : > { %2504 = vmatmul.msk.f32.vlgmr.msrb.gmra.mxu3 %vm1042_vm3, %v3067_v58  ;;  %v1884_v58 = vadd.f32 %v1883_v17, %v1882_v14  ;;  %1463 = vmatpush.msra.mxu2 %v3166_v10  ;;  %v1316_v17 = vld [vmem:[%s2688_s29 + $0xa8] sm:$0xff] }
 0x149   : > { %1483 = vmatpush.msra.mxu3 %v3169_v11  ;;  %1426 = vmatpush.msra.mxu0 %v1307_v26  ;;  %v1899_v14 = vsel %vm1873_vm4, %v1758_v3, 0.0  ;;  %v1903_v26 = vsel %vm1873_vm4, %v1760_v18, 0.0  ;;  %v1766_v53 = vmul.f32 %v1316_v17, %v1316_v17  ;;  %v1768_v3 = vmul.f32 %v3263_v0, %v3263_v0 }
 0x14a   : > { %1446 = vmatpush.msra.mxu1 %v3198_v27  ;;  %v1886_v32 = vadd.f32 %v1885_v24, %v1884_v58  ;;  %1464 = vmatpush.msra.mxu2 %v3188_v15  ;;  %v1311_v58 = vld [vmem:[%s2688_s29 + $0x80] sm:$0xff] }
 0x14b   : > { %1484 = vmatpush.msra.mxu3 %v3191_v22  ;;  %1427 = vmatpush.msra.mxu0 %v1306_v34 }
 0x14c   : > { %1447 = vmatpush.msra.mxu1 %v3213_v35  ;;  %v1888_v41 = vadd.f32 %v1887_v33, %v1886_v32  ;;  %1465 = vmatpush.msra.mxu2 %v3205_v29  ;;  %v1313_v33 = vld [vmem:[%s2688_s29 + $0x90] sm:$0xff] }
 0x14d   : > { %1485 = vmatpush.msra.mxu3 %v3208_v30  ;;  %1428 = vmatpush.msra.mxu0 %v1305_v38 }
 0x14e   : > { %1448 = vmatpush.msra.mxu1 %v3227_v43  ;;  %v1890_v48 = vadd.f32 %v1889_v42, %v1888_v41  ;;  %1466 = vmatpush.msra.mxu2 %v3220_v39  ;;  %v1765_v42 = vmul.f32 %v1315_v23, %v1315_v23 }
 0x14f   : > { %1486 = vmatpush.msra.mxu3 %v3223_v40  ;;  %1429 = vmatpush.msra.mxu0 %v1304_v28  ;;  %v1314_v28 = vld [vmem:[%s2688_s29 + $0x98] sm:$0xff] }
 0x150   : > { %1449 = vmatpush.msra.mxu1 %v3240_v16  ;;  %v1892_v55 = vadd.f32 %v1891_v49, %v1890_v48  ;;  %1467 = vmatpush.msra.mxu2 %v3233_v12  ;;  %v3303_v48 = vld [vmem:[%s2688_s29 + $0x140] sm:$0xff] }
 0x151   : > { %1487 = vmatpush.msra.mxu3 %v3236_v46  ;;  %1430 = vmatpush.msra.mxu0 %v1303_v20  ;;  %v3306_v49 = vld [vmem:[%s2688_s29 + $0x1c0] sm:$0xff] }
 0x152   : > { %1450 = vmatpush.msra.mxu1 %v3253_v25  ;;  %v1894_v62 = vadd.f32 %v1893_v56, %v1892_v55  ;;  %1468 = vmatpush.msra.mxu2 %v3246_v50  ;;  %v1913_v56 = vsel %vm1873_vm4, %v1765_v42, 0.0  ;;  %v3378_v42 = vld [vmem:[%s2688_s29 + $0x268] sm:$0xff] }
 0x153   : > { %1488 = vmatpush.msra.mxu3 %v3249_v52  ;;  %1431 = vmatpush.msra.mxu0 %v3163_v9  ;;  %v1759_v9 = vmul.f32 %v3152_v4, %v3152_v4  ;;  %v1761_v4 = vmul.f32 %v1311_v58, %v1311_v58 }
 0x154   : > { %1451 = vmatpush.msra.mxu1 %v3263_v0  ;;  %v1896_v5 = vadd.f32 %v1895_v63, %v1894_v62  ;;  %1469 = vmatpush.msra.mxu2 %v3270_v1  ;;  %v1915_v63 = vsel %vm1873_vm4, %v1766_v53, 0.0  ;;  %v1771_v0 = vmul.f32 %v3227_v43, %v3227_v43  ;;  %v1774_v43 = vmul.f32 %v3182_v19, %v3182_v19  ;;  %v3356_v19 = vld [vmem:[%s2688_s29 + $0x2f8] sm:$0xff] }
 0x155   : > { %1489 = vmatpush.msra.mxu3 %v3259_v57  ;;  %1432 = vmatpush.msra.mxu0 %v3149_v2  ;;  %v1901_v2 = vsel %vm1873_vm4, %v1759_v9, 0.0  ;;  %v1905_v32 = vsel %vm1873_vm4, %v1761_v4, 0.0  ;;  %v1769_v9 = vmul.f32 %v3253_v25, %v3253_v25  ;;  %v1772_v25 = vmul.f32 %v3213_v35, %v3213_v35  ;;  %v3388_v53 = vld [vmem:[%s2688_s29 + $0x198] sm:$0xff] }
 0x156   : > { %1452 = vmatpush.msra.mxu1 %v1317_v8  ;;  %v1898_v13 = vadd.f32 %v1897_v7, %v1896_v5  ;;  %1470 = vmatpush.msra.mxu2 %v3303_v48  ;;  %v1917_v7 = vsel %vm1873_vm4, %v1767_v60, 0.0  ;;  %v3393_v60 = vld [vmem:[%s2688_s29 + $0x260] sm:$0xff] }
 0x157   : > { %1433 = vmatpush.msra.mxu0 %v3138_v59  ;;  %v1762_v59 = vmul.f32 %v1312_v31, %v1312_v31  ;;  %1490 = vmatpush.msra.mxu3 %v3306_v49  ;;  %v1921_v18 = vsel %vm1873_vm4, %v1769_v9, 0.0 }
 0x158   : > { %1453 = vmatpush.msra.mxu1 %v1316_v17  ;;  %v1900_v20 = vadd.f32 %v1899_v14, %v1898_v13  ;;  %v1919_v14 = vsel %vm1873_vm4, %v1768_v3, 0.0  ;;  %v1770_v17 = vmul.f32 %v3240_v16, %v3240_v16  ;;  %v1773_v16 = vmul.f32 %v3198_v27, %v3198_v27  ;;  %v3402_v3 = vld [vmem:[%s2688_s29 + $0x190] sm:$0xff] }
 0x159   : > { %1434 = vmatpush.msra.mxu0 %v3124_v51  ;;  %v1763_v51 = vmul.f32 %v1313_v33, %v1313_v33  ;;  %v1907_v38 = vsel %vm1873_vm4, %v1762_v59, 0.0  ;;  %v3348_v59 = vld [vmem:[%s2688_s29 + $0x278] sm:$0xff]  ;;  %v1775_v27 = vmul.f32 %v3155_v6, %v3155_v6  ;;  %v1332_v6 = vld [vmem:[%s2688_s29 + $0x128] sm:$0xff] }
 0x15a   : > { %1454 = vmatpush.msra.mxu1 %v1315_v23  ;;  %v1902_v24 = vadd.f32 %v1901_v2, %v1900_v20  ;;  %v1923_v2 = vsel %vm1873_vm4, %v1770_v17, 0.0  ;;  %v1929_v35 = vsel %vm1873_vm4, %v1773_v16, 0.0  ;;  %v1782_v16 = vmul.f32 %v1332_v6, %v1332_v6 }
 0x15b   : > { %1435 = vmatpush.msra.mxu0 %v3111_v44  ;;  %v1764_v44 = vmul.f32 %v1314_v28, %v1314_v28  ;;  %v1909_v41 = vsel %vm1873_vm4, %v1763_v51, 0.0  ;;  %v3365_v51 = vld [vmem:[%s2688_s29 + $0x270] sm:$0xff] }
 0x15c   : > { %1455 = vmatpush.msra.mxu1 %v1314_v28  ;;  %v1904_v61 = vadd.f32 %v1903_v26, %v1902_v24  ;;  %v1927_v24 = vsel %vm1873_vm4, %v1772_v25, 0.0  ;;  %v3342_v28 = vld [vmem:[%s2688_s29 + $0x130] sm:$0xff] }
 0x15d   : > { %1436 = vmatpush.msra.mxu0 %v3114_v45  ;;  %v1911_v47 = vsel %vm1873_vm4, %v1764_v44, 0.0 }
 0x15e   : > { %1456 = vmatpush.msra.mxu1 %v1313_v33  ;;  %v1906_v34 = vadd.f32 %v1905_v32, %v1904_v61  ;;  %v1931_v32 = vsel %vm1873_vm4, %v1774_v43, 0.0  ;;  %v3359_v33 = vld [vmem:[%s2688_s29 + $0x1a8] sm:$0xff]  ;;  %v1783_v43 = vmul.f32 %v3342_v28, %v3342_v28 }
 0x15f   : > { %1437 = vmatpush.msra.mxu0 %v3097_v36  ;;  %v3311_v36 = vld [vmem:[%s2688_s29 + $0x1b8] sm:$0xff] }
 0x160   : > { %1457 = vmatpush.msra.mxu1 %v1312_v31  ;;  %v1908_v21 = vadd.f32 %v1907_v38, %v1906_v34  ;;  %1491 = vmatpush.msra.mxu3 %v3311_v36  ;;  %v3345_v31 = vld [vmem:[%s2688_s29 + $0x1b0] sm:$0xff]  ;;  %v1776_v38 = vmul.f32 %v3128_v54, %v3128_v54  ;;  %v1331_v54 = vld [vmem:[%s2688_s29 + $0x120] sm:$0xff] }
 0x161   : > { %1438 = vmatpush.msra.mxu0 %v3100_v37  ;;  %v3315_v37 = vld [vmem:[%s2688_s29 + $0x138] sm:$0xff]  ;;  %v3368_v34 = vld [vmem:[%s2688_s29 + $0x2f0] sm:$0xff]  ;;  %v1781_v25 = vmul.f32 %v1331_v54, %v1331_v54 }
 0x162   : > { %1458 = vmatpush.msra.mxu1 %v1311_v58  ;;  %v1910_v45 = vadd.f32 %v1909_v41, %v1908_v21  ;;  %1471 = vmatpush.msra.mxu2 %v3315_v37  ;;  %v1925_v58 = vsel %vm1873_vm4, %v1771_v0, 0.0  ;;  %v1933_v21 = vsel %vm1873_vm4, %v1775_v27, 0.0  ;;  %v3375_v41 = vld [vmem:[%s2688_s29 + $0x1a0] sm:$0xff]  ;;  %v3418_v27 = vpop.permute.xlu2 %1039 }
 0x163   : > { %1492 = vmatpush.msra.mxu3 %v3345_v31  ;;  %1503 = vmatpush.msrb.mxu0 %v3348_v59 }
 0x164   : > { %v1912_v55 = vadd.f32 %v1911_v47, %v1910_v45  ;;  %1472 = vmatpush.msra.mxu2 %v3342_v28  ;;  %1523 = vmatpush.msrb.mxu1 %v3356_v19  ;;  %v3381_v45 = vld [vmem:[%s2688_s29 + $0x2e8] sm:$0xff]  ;;  %v1330_v47 = vld [vmem:[%s2688_s29 + $0x118] sm:$0xff]  ;;  %v1786_v28 = vmul.f32 %v3270_v1, %v3270_v1 }
 0x165   : > { %1493 = vmatpush.msra.mxu3 %v3359_v33  ;;  %1504 = vmatpush.msrb.mxu0 %v3365_v51  ;;  %v1780_v0 = vmul.f32 %v1330_v47, %v1330_v47 }
 0x166   : > { %v1914_v62 = vadd.f32 %v1913_v56, %v1912_v55  ;;  %1473 = vmatpush.msra.mxu2 %v1332_v6  ;;  %1524 = vmatpush.msrb.mxu1 %v3368_v34  ;;  %v1935_v56 = vsel %vm1873_vm4, %v1776_v38, 0.0  ;;  %v1949_v38 = vsel %vm1873_vm4, %v1783_v43, 0.0  ;;  %v1785_v6 = vmul.f32 %v3303_v48, %v3303_v48 }
 0x167   : > { %1494 = vmatpush.msra.mxu3 %v3375_v41  ;;  %1505 = vmatpush.msrb.mxu0 %v3378_v42  ;;  %v1955_v48 = vsel %vm1873_vm4, %v1786_v28, 0.0 }
 0x168   : > { %v1916_v5 = vadd.f32 %v1915_v63, %v1914_v62  ;;  %1474 = vmatpush.msra.mxu2 %v1331_v54  ;;  %v3396_v62 = vld [vmem:[%s2688_s29 + $0x2e0] sm:$0xff]  ;;  %v1329_v63 = vld [vmem:[%s2688_s29 + $0x110] sm:$0xff]  ;;  %1525 = vmatpush.msrb.mxu1 %v3381_v45 }
 0x169   : > { %1495 = vmatpush.msra.mxu3 %v3388_v53  ;;  %1506 = vmatpush.msrb.mxu0 %v3393_v60  ;;  %v1779_v17 = vmul.f32 %v1329_v63, %v1329_v63 }
 0x16a   : > { %v1918_v13 = vadd.f32 %v1917_v7, %v1916_v5  ;;  %v1328_v5 = vld [vmem:[%s2688_s29 + $0x108] sm:$0xff]  ;;  %v1327_v7 = vld [vmem:[%s2688_s29 + $0x100] sm:$0xff]  ;;  %1475 = vmatpush.msra.mxu2 %v1330_v47  ;;  %1526 = vmatpush.msrb.mxu1 %v3396_v62  ;;  %v1953_v47 = vsel %vm1873_vm4, %v1785_v6, 0.0 }
 0x16b   : > { %1496 = vmatpush.msra.mxu3 %v3402_v3 }
 0x16c   : > { %v1920_v8 = vadd.f32 %v1919_v14, %v1918_v13  ;;  %v1777_v13 = vmul.f32 %v1327_v7, %v1327_v7  ;;  %v1778_v14 = vmul.f32 %v1328_v5, %v1328_v5  ;;  %1476 = vmatpush.msra.mxu2 %v1329_v63 }
 0x16e   : > { %v1922_v20 = vadd.f32 %v1921_v18, %v1920_v8  ;;  %v1937_v8 = vsel %vm1873_vm4, %v1777_v13, 0.0  ;;  %v1939_v18 = vsel %vm1873_vm4, %v1778_v14, 0.0  ;;  %1477 = vmatpush.msra.mxu2 %v1328_v5 }
 0x170   : > { %v1924_v23 = vadd.f32 %v1923_v2, %v1922_v20  ;;  %v1941_v2 = vsel %vm1873_vm4, %v1779_v17, 0.0  ;;  %1478 = vmatpush.msra.mxu2 %v1327_v7 }
 0x172   : > { %v1926_v4 = vadd.f32 %v1925_v58, %v1924_v23  ;;  %v1943_v58 = vsel %vm1873_vm4, %v1780_v0, 0.0 }
 0x174   : > { %v1928_v26 = vadd.f32 %v1927_v24, %v1926_v4  ;;  %v1945_v24 = vsel %vm1873_vm4, %v1781_v25, 0.0 }
 0x176   : > { %v1930_v61 = vadd.f32 %v1929_v35, %v1928_v26  ;;  %v1947_v35 = vsel %vm1873_vm4, %v1782_v16, 0.0 }
 0x178   : > { %v1932_v44 = vadd.f32 %v1931_v32, %v1930_v61  ;;  %v1784_v61 = vmul.f32 %v3315_v37, %v3315_v37  ;;  %v1787_v37 = vmul.f32 %v3246_v50, %v3246_v50  ;;  %v1789_v50 = vmul.f32 %v3220_v39, %v3220_v39 }
 0x17a   : > { %v1934_v55 = vadd.f32 %v1933_v21, %v1932_v44  ;;  %v1951_v21 = vsel %vm1873_vm4, %v1784_v61, 0.0  ;;  %v1957_v17 = vsel %vm1873_vm4, %v1787_v37, 0.0  ;;  %v1961_v39 = vsel %vm1873_vm4, %v1789_v50, 0.0 }
 0x17c   : > { %v1936_v9 = vadd.f32 %v1935_v56, %v1934_v55  ;;  %v1062_v55 = vpop.f32.mrf.mxu0 }
 0x17d   : > { %v1082_v56 = vpop.f32.mrf.mxu1  ;;  %v1063_v5 = vadd.f32 %v1062_v55, %v3418_v27  ;;  %v1344_v55 = vld [vmem:[%s2688_s29 + $0x188] sm:$0xff] }
 0x17e   : > { %v1938_v20 = vadd.f32 %v1937_v8, %v1936_v9  ;;  %v1083_v7 = vadd.f32 %v1082_v56, %v3418_v27  ;;  %v1788_v9 = vmul.f32 %v3233_v12, %v3233_v12  ;;  %v3437_v8 = vpop.permute.xlu2 %1214  ;;  %1497 = vmatpush.msra.mxu3 %v1344_v55 }
 0x17f   : > { %v1205_v1 = vmax.f32 %v1063_v5, 0.0 }
 0x180   : > { %v1940_v23 = vadd.f32 %v1939_v18, %v1938_v20  ;;  %v1206_v14 = vmax.f32 %v1083_v7, 0.0 }
 0x181   : > { %v1217_v16 = vmul.f32 %v3437_v8, %v1205_v1 }
 0x182   : > { %v1942_v4 = vadd.f32 %v1941_v2, %v1940_v23  ;;  %v1959_v2 = vsel %vm1873_vm4, %v1788_v9, 0.0  ;;  %v1790_v23 = vmul.f32 %v3205_v29, %v3205_v29  ;;  %v3464_v9 = vld [vmem:[%s2688_s29 + $0x2d8] sm:$0xff] }
 0x183   : > { %1527 = vmatpush.msrb.mxu1 %v3464_v9 }
 0x184   : > { %v1944_v26 = vadd.f32 %v1943_v58, %v1942_v4  ;;  %v1218_v4 = vmul.f32 %v3437_v8, %v1206_v14  ;;  %v1963_v61 = vsel %vm1873_vm4, %v1790_v23, 0.0 }
 0x186   : > { %v1946_v32 = vadd.f32 %v1945_v24, %v1944_v26  ;;  %v1791_v26 = vmul.f32 %v3188_v15, %v3188_v15 }
 0x188   : > { %v1948_v44 = vadd.f32 %v1947_v35, %v1946_v32 }
 0x18a   : > { %v1950_v54 = vadd.f32 %v1949_v38, %v1948_v44  ;;  %v1102_v0 = vpop.f32.mrf.mxu2  ;;  %v1792_v38 = vmul.f32 %v3166_v10, %v3166_v10  ;;  %v1343_v44 = vld [vmem:[%s2688_s29 + $0x180] sm:$0xff] }
 0x18b   : > { %v1122_v20 = vpop.f32.mrf.mxu3  ;;  %v1103_v25 = vadd.f32 %v1102_v0, %v3418_v27  ;;  %v1793_v15 = vmul.f32 %v1343_v44, %v1343_v44  ;;  %1498 = vmatpush.msra.mxu3 %v1343_v44 }
 0x18c   : > { %v1952_v63 = vadd.f32 %v1951_v21, %v1950_v54  ;;  %v1123_v12 = vadd.f32 %v1122_v20, %v3418_v27  ;;  %v1965_v21 = vsel %vm1873_vm4, %v1791_v26, 0.0  ;;  %v1225_v54 = vrot.slane %v1217_v16, 4  ;;  %v3470_v20 = vld [vmem:[%s2688_s29 + $0x250] sm:$0xff] }
 0x18d   : > { %v1207_v24 = vmax.f32 %v1103_v25, 0.0  ;;  %v1967_v37 = vsel %vm1873_vm4, %v1792_v38, 0.0  ;;  %v1969_v14 = vsel %vm1873_vm4, %v1793_v15, 0.0  ;;  %v1795_v25 = vmul.f32 %v3402_v3, %v3402_v3  ;;  %v3487_v3 = vld [vmem:[%s2688_s29 + $0x378] sm:$0xff]  ;;  %v3513_v15 = vld [vmem:[%s2688_s29 + $0x3f0] sm:$0xff] }
 0x18e   : > { %v1954_v13 = vadd.f32 %v1953_v47, %v1952_v63  ;;  %v1208_v43 = vmax.f32 %v1123_v12, 0.0  ;;  %v1231_v47 = vrot.slane %v1218_v4, 4  ;;  %v1226_v5 = vadd.f32 %v1225_v54, %v1217_v16  ;;  %4011 = vst [vmem:[#allocation5_spill] sm:$0xff] %v3487_v3  ;;  %1543 = vmatpush.msrb.mxu2 %v3487_v3 }
 0x18f   : > { %v1219_v32 = vmul.f32 %v3437_v8, %v1207_v24  ;;  %v3481_v24 = vld [vmem:[%s2688_s29 + $0x248] sm:$0xff]  ;;  %v1796_v26 = vmul.f32 %v3388_v53, %v3388_v53  ;;  %v3500_v53 = vld [vmem:[%s2688_s29 + $0x240] sm:$0xff]  ;;  %v1797_v54 = vmul.f32 %v3375_v41, %v3375_v41  ;;  %4014 = vst [vmem:[#allocation8_spill] sm:$0xff] %v3513_v15  ;;  %v3518_v41 = vpop.permute.xlu0 %1275 }
 0x190   : > { %v1956_v18 = vadd.f32 %v1955_v48, %v1954_v13  ;;  %v1220_v29 = vmul.f32 %v3437_v8, %v1208_v43  ;;  %v1232_v10 = vadd.f32 %v1231_v47, %v1218_v4  ;;  %v3461_v48 = vld [vmem:[%s2688_s29 + $0x258] sm:$0xff]  ;;  %v1794_v13 = vmul.f32 %v1344_v55, %v1344_v55  ;;  %v3484_v43 = vld [vmem:[%s2688_s29 + $0x2c8] sm:$0xff] }
 0x191   : > { %v1237_v28 = vrot.slane %v1219_v32, 4  ;;  %1507 = vmatpush.msrb.mxu0 %v3461_v48  ;;  %v1227_v50 = vrot.slane %v1226_v5, 2 }
 0x192   : > { %v1958_v58 = vadd.f32 %v1957_v17, %v1956_v18  ;;  %v1243_v7 = vrot.slane %v1220_v29, 4  ;;  %v1233_v18 = vrot.slane %v1232_v10, 2  ;;  %v1971_v23 = vsel %vm1873_vm4, %v1794_v13, 0.0 }
 0x193   : > { %v1238_v63 = vadd.f32 %v1237_v28, %v1219_v32  ;;  %1508 = vmatpush.msrb.mxu0 %v3470_v20  ;;  %v1228_v16 = vadd.f32 %v1227_v50, %v1226_v5  ;;  %v3495_v32 = vld [vmem:[%s2688_s29 + $0x3f8] sm:$0xff]  ;;  %v3506_v28 = vld [vmem:[%s2688_s29 + $0x370] sm:$0xff] }
 0x194   : > { %v1960_v35 = vadd.f32 %v1959_v2, %v1958_v58  ;;  %v1244_v0 = vadd.f32 %v1243_v7, %v1220_v29  ;;  %v3473_v2 = vld [vmem:[%s2688_s29 + $0x2d0] sm:$0xff]  ;;  %v1234_v4 = vadd.f32 %v1233_v18, %v1232_v10  ;;  %4012 = vst [vmem:[#allocation6_spill] sm:$0xff] %v3495_v32  ;;  %1563 = vmatpush.msrb.mxu3 %v3495_v32  ;;  %v3521_v5 = vld [vmem:[%s2688_s29 + $0x238] sm:$0xff]  ;;  %v3527_v7 = vld [vmem:[%s2688_s29 + $0x368] sm:$0xff]  ;;  %v1977_v18 = vsel %vm1873_vm4, %v1797_v54, 0.0 }
 0x195   : > { %v1239_v17 = vrot.slane %v1238_v63, 2  ;;  %1528 = vmatpush.msrb.mxu1 %v3473_v2  ;;  %1509 = vmatpush.msrb.mxu0 %v3481_v24  ;;  %v1229_v38 = vrot.slane %v1228_v16, 1  ;;  %4013 = vst [vmem:[#allocation7_spill] sm:$0xff] %v3506_v28  ;;  %v3524_v10 = vld [vmem:[%s2688_s29 + $0x2b8] sm:$0xff]  ;;  %v1801_v54 = vmul.f32 %v3306_v49, %v3306_v49  ;;  %v3599_v49 = vld [vmem:[%s2688_s29 + $0x3d0] sm:$0xff] }
 0x196   : > { %v1962_v6 = vadd.f32 %v1961_v39, %v1960_v35  ;;  %v1245_v39 = vrot.slane %v1244_v0, 2  ;;  %1544 = vmatpush.msrb.mxu2 %v3506_v28  ;;  %1564 = vmatpush.msrb.mxu3 %v3513_v15  ;;  %4015 = vst [vmem:[#allocation9_spill] sm:$0xff] %v3527_v7  ;;  %v3655_v15 = vld [vmem:[%s2688_s29 + $0x338] sm:$0xff]  ;;  %v3717_v28 = vld [vmem:[%s2688_s29 + $0x390] sm:$0xff] }
 0x197   : > { %v1240_v58 = vadd.f32 %v1239_v17, %v1238_v63  ;;  %1529 = vmatpush.msrb.mxu1 %v3484_v43  ;;  %1510 = vmatpush.msrb.mxu0 %v3500_v53  ;;  %v1975_v63 = vsel %vm1873_vm4, %v1796_v26, 0.0  ;;  %v3534_v17 = vld [vmem:[%s2688_s29 + $0x3e8] sm:$0xff]  ;;  %v1800_v26 = vmul.f32 %v3311_v36, %v3311_v36  ;;  %4022 = vst [vmem:[#allocation16_spill] sm:$0xff] %v3599_v49 }
 0x198   : > { %v1964_v56 = vadd.f32 %v1963_v61, %v1962_v6  ;;  %v1973_v61 = vsel %vm1873_vm4, %v1795_v25, 0.0  ;;  %v1235_v6 = vrot.slane %v1234_v4, 1  ;;  %v1246_v44 = vadd.f32 %v1245_v39, %v1244_v0  ;;  %4016 = vst [vmem:[#allocation10_spill] sm:$0xff] %v3534_v17  ;;  %1545 = vmatpush.msrb.mxu2 %v3527_v7  ;;  %1565 = vmatpush.msrb.mxu3 %v3534_v17  ;;  %v3541_v0 = vld [vmem:[%s2688_s29 + $0x230] sm:$0xff]  ;;  %v3547_v25 = vld [vmem:[%s2688_s29 + $0x360] sm:$0xff]  ;;  %v3723_v7 = vld [vmem:[%s2688_s29 + $0x308] sm:$0xff] }
 0x199   : > { %v1241_v29 = vrot.slane %v1240_v58, 1  ;;  %1511 = vmatpush.msrb.mxu0 %v3521_v5  ;;  %4017 = vst [vmem:[#allocation11_spill] sm:$0xff] %v3547_v25 }
 0x19a   : > { %v1966_v1 = vadd.f32 %v1965_v21, %v1964_v56  ;;  %v3503_v21 = vld [vmem:[%s2688_s29 + $0x2c0] sm:$0xff]  ;;  %v1230_v56 = vadd.f32 %v1229_v38, %v1228_v16  ;;  %v1236_v13 = vadd.f32 %v1235_v6, %v1234_v4  ;;  %1546 = vmatpush.msrb.mxu2 %v3547_v25  ;;  %4030 = vst [vmem:[#allocation24_spill] sm:$0xff] %v3717_v28 }
 0x19b   : > { %1530 = vmatpush.msrb.mxu1 %v3503_v21  ;;  %v1242_v55 = vadd.f32 %v1241_v29, %v1240_v58  ;;  %1512 = vmatpush.msrb.mxu0 %v3541_v0  ;;  %v3554_v16 = vld [vmem:[%s2688_s29 + $0x3e0] sm:$0xff]  ;;  %v3571_v29 = vld [vmem:[%s2688_s29 + $0x358] sm:$0xff] }
 0x19c   : > { %v1968_v12 = vadd.f32 %v1967_v37, %v1966_v1  ;;  %v1247_v37 = vrot.slane %v1246_v44, 1  ;;  %v1798_v1 = vmul.f32 %v3359_v33, %v3359_v33  ;;  %v3544_v33 = vld [vmem:[%s2688_s29 + $0x2b0] sm:$0xff]  ;;  %4018 = vst [vmem:[#allocation12_spill] sm:$0xff] %v3554_v16  ;;  %v1278_v39 = vadd.f32 %v3518_v41, %v1230_v56  ;;  %1566 = vmatpush.msrb.mxu3 %v3554_v16  ;;  %v3589_v56 = vld [vmem:[%s2688_s29 + $0x2a0] sm:$0xff] }
 0x19d   : > { %1531 = vmatpush.msrb.mxu1 %v3524_v10  ;;  %v1280_v50 = vadd.f32 %v3518_v41, %v1242_v55  ;;  %4019 = vst [vmem:[#allocation13_spill] sm:$0xff] %v3571_v29  ;;  %v1279_v38 = vadd.f32 %v3518_v41, %v1236_v13  ;;  %1547 = vmatpush.msrb.mxu2 %v3571_v29  ;;  %v3586_v55 = vld [vmem:[%s2688_s29 + $0x220] sm:$0xff] }
 0x19e   : > { %v1970_v35 = vadd.f32 %v1969_v14, %v1968_v12  ;;  %v1248_v12 = vadd.f32 %v1247_v37, %v1246_v44  ;;  %v3578_v44 = vld [vmem:[%s2688_s29 + $0x3d8] sm:$0xff]  ;;  %v3592_v37 = vld [vmem:[%s2688_s29 + $0x350] sm:$0xff] }
 0x19f   : > { %1532 = vmatpush.msrb.mxu1 %v3544_v33  ;;  %v3556_v4 = vmax.f32 %v1280_v50, 0.0  ;;  %4020 = vst [vmem:[#allocation14_spill] sm:$0xff] %v3578_v44  ;;  %1567 = vmatpush.msrb.mxu3 %v3578_v44  ;;  %v1983_v50 = vsel %vm1873_vm4, %v1800_v26, 0.0  ;;  %v1803_v26 = vmul.f32 %v3249_v52, %v3249_v52  ;;  %v3641_v52 = vld [vmem:[%s2688_s29 + $0x3c0] sm:$0xff]  ;;  %v3671_v44 = vld [vmem:[%s2688_s29 + $0x330] sm:$0xff] }
 0x1a0   : > { %v1972_v47 = vadd.f32 %v1971_v23, %v1970_v35  ;;  %v1799_v23 = vmul.f32 %v3345_v31, %v3345_v31  ;;  %v1979_v35 = vsel %vm1873_vm4, %v1798_v1, 0.0  ;;  %v3565_v31 = vld [vmem:[%s2688_s29 + $0x228] sm:$0xff]  ;;  %v1281_v6 = vadd.f32 %v3518_v41, %v1248_v12  ;;  %4021 = vst [vmem:[#allocation15_spill] sm:$0xff] %v3592_v37  ;;  %1548 = vmatpush.msrb.mxu2 %v3592_v37  ;;  %v3611_v12 = vld [vmem:[%s2688_s29 + $0x218] sm:$0xff] }
 0x1a1   : > { %1513 = vmatpush.msrb.mxu0 %v3565_v31  ;;  %1479 = vmatmul.f32.vlgmr.msra.gmra.mxu2 %v3556_v4  ;;  %v3601_v1 = vmax.f32 %v1278_v39, 0.0  ;;  %v3622_v39 = vld [vmem:[%s2688_s29 + $0x3c8] sm:$0xff]  ;;  %4024 = vst [vmem:[#allocation18_spill] sm:$0xff] %v3641_v52  ;;  %v1989_v17 = vsel %vm1873_vm4, %v1803_v26, 0.0  ;;  %v1812_v25 = vmul.f32 %v3611_v12, %v3611_v12 }
 0x1a2   : > { %v1974_v14 = vadd.f32 %v1973_v61, %v1972_v47  ;;  %v3568_v61 = vld [vmem:[%s2688_s29 + $0x2a8] sm:$0xff]  ;;  %v1981_v47 = vsel %vm1873_vm4, %v1799_v23, 0.0  ;;  %v3614_v23 = vld [vmem:[%s2688_s29 + $0x298] sm:$0xff]  ;;  %1568 = vmatpush.msrb.mxu3 %v3599_v49  ;;  %4023 = vst [vmem:[#allocation17_spill] sm:$0xff] %v3622_v39  ;;  %v3674_v49 = vld [vmem:[%s2688_s29 + $0x3b0] sm:$0xff] }
 0x1a3   : > { %1533 = vmatpush.msrb.mxu1 %v3568_v61  ;;  %1514 = vmatpush.msrb.mxu0 %v3586_v55  ;;  %4026 = vst [vmem:[#allocation20_spill] sm:$0xff] %v3674_v49 }
 0x1a4   : > { %v1976_v58 = vadd.f32 %v1975_v63, %v1974_v14  ;;  %v3594_v63 = vmax.f32 %v1281_v6, 0.0  ;;  %v1802_v14 = vmul.f32 %v3259_v57, %v3259_v57  ;;  %1439 = vmatmul.f32.vlgmr.msra.gmra.mxu0 %v3601_v1  ;;  %v3619_v57 = vld [vmem:[%s2688_s29 + $0x348] sm:$0xff]  ;;  %v3633_v6 = vld [vmem:[%s2688_s29 + $0x290] sm:$0xff]  ;;  %1569 = vmatpush.msrb.mxu3 %v3622_v39 }
 0x1a5   : > { %1534 = vmatpush.msrb.mxu1 %v3589_v56  ;;  %1515 = vmatpush.msrb.mxu0 %v3611_v12 }
 0x1a6   : > { %v1978_v36 = vadd.f32 %v1977_v18, %v1976_v58  ;;  %v3608_v18 = vmax.f32 %v1279_v38, 0.0  ;;  %1499 = vmatmul.f32.vlgmr.msra.gmra.mxu3 %v3594_v63  ;;  %v3630_v38 = vld [vmem:[%s2688_s29 + $0x210] sm:$0xff]  ;;  %1549 = vmatpush.msrb.mxu2 %v3619_v57 }
 0x1a7   : > { %1535 = vmatpush.msrb.mxu1 %v3614_v23  ;;  %1516 = vmatpush.msrb.mxu0 %v3630_v38 }
 0x1a8   : > { %v1980_v13 = vadd.f32 %v1979_v35, %v1978_v36  ;;  %v1985_v35 = vsel %vm1873_vm4, %v1801_v54, 0.0  ;;  %1459 = vmatmul.f32.vlgmr.msra.gmra.mxu1 %v3608_v18  ;;  %v1804_v54 = vmul.f32 %v3236_v46, %v3236_v46  ;;  %v3658_v46 = vld [vmem:[%s2688_s29 + $0x3b8] sm:$0xff]  ;;  %1570 = vmatpush.msrb.mxu3 %v3641_v52  ;;  %v1807_v52 = vmul.f32 %v3191_v22, %v3191_v22 }
 0x1a9   : > { %1536 = vmatpush.msrb.mxu1 %v3633_v6  ;;  %4025 = vst [vmem:[#allocation19_spill] sm:$0xff] %v3658_v46 }
 0x1aa   : > { %v1982_v58 = vadd.f32 %v1981_v47, %v1980_v13  ;;  %v3638_v47 = vld [vmem:[%s2688_s29 + $0x340] sm:$0xff]  ;;  %v1987_v13 = vsel %vm1873_vm4, %v1802_v14, 0.0  ;;  %v1805_v14 = vmul.f32 %v3223_v40, %v3223_v40  ;;  %v1806_v40 = vmul.f32 %v3208_v30, %v3208_v30  ;;  %1571 = vmatpush.msrb.mxu3 %v3658_v46 }
 0x1ab   : > { %1550 = vmatpush.msrb.mxu2 %v3638_v47  ;;  %v1991_v26 = vsel %vm1873_vm4, %v1804_v54, 0.0  ;;  %v3697_v54 = vld [vmem:[%s2688_s29 + $0x3a0] sm:$0xff]  ;;  %v1808_v46 = vmul.f32 %v3169_v11, %v3169_v11 }
 0x1ac   : > { %v1984_v36 = vadd.f32 %v1983_v50, %v1982_v58  ;;  %v1360_v50 = vld [vmem:[%s2688_s29 + $0x208] sm:$0xff]  ;;  %v1993_v30 = vsel %vm1873_vm4, %v1805_v14, 0.0  ;;  %1572 = vmatpush.msrb.mxu3 %v3674_v49  ;;  %4028 = vst [vmem:[#allocation22_spill] sm:$0xff] %v3697_v54  ;;  %v1995_v3 = vsel %vm1873_vm4, %v1806_v40, 0.0  ;;  %v3705_v14 = vld [vmem:[%s2688_s29 + $0x318] sm:$0xff]  ;;  %v3714_v40 = vld [vmem:[%s2688_s29 + $0x310] sm:$0xff] }
 0x1ad   : > { %v3650_v58 = vld [vmem:[%s2688_s29 + $0x288] sm:$0xff]  ;;  %1517 = vmatpush.msrb.mxu0 %v1360_v50  ;;  %1551 = vmatpush.msrb.mxu2 %v3655_v15  ;;  %v3708_v49 = vld [vmem:[%s2688_s29 + $0x398] sm:$0xff] }
 0x1ae   : > { %v1986_v32 = vadd.f32 %v1985_v35, %v1984_v36  ;;  %v1359_v35 = vld [vmem:[%s2688_s29 + $0x200] sm:$0xff]  ;;  %1537 = vmatpush.msrb.mxu1 %v3650_v58  ;;  %4029 = vst [vmem:[#allocation23_spill] sm:$0xff] %v3708_v49 }
 0x1af   : > { %v3667_v36 = vld [vmem:[%s2688_s29 + $0x280] sm:$0xff]  ;;  %1518 = vmatpush.msrb.mxu0 %v1359_v35  ;;  %1552 = vmatpush.msrb.mxu2 %v3671_v44 }
 0x1b0   : > { %v1988_v16 = vadd.f32 %v1987_v13, %v1986_v32  ;;  %1538 = vmatpush.msrb.mxu1 %v3667_v36  ;;  %v3683_v32 = vld [vmem:[%s2688_s29 + $0x328] sm:$0xff] }
 0x1b1   : > { %v3686_v13 = vld [vmem:[%s2688_s29 + $0x3a8] sm:$0xff]  ;;  %1553 = vmatpush.msrb.mxu2 %v3683_v32 }
 0x1b2   : > { %v1990_v39 = vadd.f32 %v1989_v17, %v1988_v16  ;;  %4027 = vst [vmem:[#allocation21_spill] sm:$0xff] %v3686_v13  ;;  %v3694_v16 = vld [vmem:[%s2688_s29 + $0x320] sm:$0xff]  ;;  %1573 = vmatpush.msrb.mxu3 %v3686_v13  ;;  %v1810_v13 = vmul.f32 %v1360_v50, %v1360_v50 }
 0x1b3   : > { %1554 = vmatpush.msrb.mxu2 %v3694_v16 }
 0x1b4   : > { %v1992_v17 = vadd.f32 %v1991_v26, %v1990_v39  ;;  %v1809_v39 = vmul.f32 %v1359_v35, %v1359_v35  ;;  %v1997_v26 = vsel %vm1873_vm4, %v1807_v52, 0.0  ;;  %1574 = vmatpush.msrb.mxu3 %v3697_v54  ;;  %v3726_v54 = vld [vmem:[%s2688_s29 + $0x388] sm:$0xff] }
 0x1b5   : > { %1555 = vmatpush.msrb.mxu2 %v3705_v14  ;;  %4031 = vst [vmem:[#allocation25_spill] sm:$0xff] %v3726_v54 }
 0x1b6   : > { %v1994_v22 = vadd.f32 %v1993_v30, %v1992_v17  ;;  %v1999_v30 = vsel %vm1873_vm4, %v1808_v46, 0.0  ;;  %1575 = vmatpush.msrb.mxu3 %v3708_v49  ;;  %v2001_v50 = vsel %vm1873_vm4, %v1809_v39, 0.0  ;;  %v3739_v49 = vld [vmem:[%s2688_s29 + $0x380] sm:$0xff] }
 0x1b7   : > { %1556 = vmatpush.msrb.mxu2 %v3714_v40  ;;  %4032 = vst [vmem:[#allocation26_spill] sm:$0xff] %v3739_v49 }
 0x1b8   : > { %v1996_v11 = vadd.f32 %v1995_v3, %v1994_v22  ;;  %v1811_v3 = vmul.f32 %v3630_v38, %v3630_v38  ;;  %1576 = vmatpush.msrb.mxu3 %v3717_v28  ;;  %v2003_v38 = vsel %vm1873_vm4, %v1810_v13, 0.0  ;;  %v2007_v13 = vsel %vm1873_vm4, %v1812_v25, 0.0 }
 0x1b9   : > { %1557 = vmatpush.msrb.mxu2 %v3723_v7  ;;  %v1816_v25 = vmul.f32 %v3521_v5, %v3521_v5 }
 0x1ba   : > { %v1998_v35 = vadd.f32 %v1997_v26, %v1996_v11  ;;  %v3736_v11 = vld [vmem:[%s2688_s29 + $0x300] sm:$0xff]  ;;  %1577 = vmatpush.msrb.mxu3 %v3726_v54 }
 0x1bb   : > { %1558 = vmatpush.msrb.mxu2 %v3736_v11 }
 0x1bc   : > { %v1142_v52 = vpop.f32.mrf.mxu0  ;;  %v2000_v26 = vadd.f32 %v1999_v30, %v1998_v35  ;;  %v2005_v30 = vsel %vm1873_vm4, %v1811_v3, 0.0  ;;  %1578 = vmatpush.msrb.mxu3 %v3739_v49  ;;  %v1587_v49 = vmul.f32 %v3601_v1, %v3601_v1 }
 0x1bd   : > { %v1162_v17 = vpop.f32.mrf.mxu1  ;;  %v1143_v22 = vadd.f32 %v1142_v52, %v3418_v27 }
 0x1be   : > { %v1163_v46 = vadd.f32 %v1162_v17, %v3418_v27  ;;  %v2002_v52 = vadd.f32 %v2001_v50, %v2000_v26  ;;  %v1813_v17 = vmul.f32 %v3586_v55, %v3586_v55  ;;  %v1814_v50 = vmul.f32 %v3565_v31, %v3565_v31 }
 0x1bf   : > { %v1209_v29 = vmax.f32 %v1143_v22, 0.0  ;;  %v1815_v55 = vmul.f32 %v3541_v0, %v3541_v0  ;;  %v1588_v0 = vmul.f32 %v3608_v18, %v3608_v18  ;;  %v2015_v18 = vsel %vm1873_vm4, %v1816_v25, 0.0 }
 0x1c0   : > { %v1210_v39 = vmax.f32 %v1163_v46, 0.0  ;;  %v2004_v12 = vadd.f32 %v2003_v38, %v2002_v52  ;;  %v2011_v31 = vsel %vm1873_vm4, %v1814_v50, 0.0  ;;  %v1820_v25 = vmul.f32 %v3461_v48, %v3461_v48 }
 0x1c1   : > { %v1221_v35 = vmul.f32 %v3437_v8, %v1209_v29  ;;  %v2009_v29 = vsel %vm1873_vm4, %v1813_v17, 0.0  ;;  %v2013_v17 = vsel %vm1873_vm4, %v1815_v55, 0.0  ;;  %v1596_v55 = vsel %vm1595_vm5, %v1587_v49, 0.0 }
 0x1c2   : > { %v1222_v28 = vmul.f32 %v3437_v8, %v1210_v39  ;;  %v2006_v26 = vadd.f32 %v2005_v30, %v2004_v12 }
 0x1c3   : > { %v1249_v22 = vrot.slane %v1221_v35, 4 }
 0x1c4   : > { %v1255_v46 = vrot.slane %v1222_v28, 4  ;;  %v2008_v54 = vadd.f32 %v2007_v13, %v2006_v26 }
 0x1c5   : > { %v1250_v3 = vadd.f32 %v1249_v22, %v1221_v35  ;;  %v1818_v22 = vmul.f32 %v3481_v24, %v3481_v24 }
 0x1c6   : > { %v1256_v39 = vadd.f32 %v1255_v46, %v1222_v28  ;;  %v2010_v37 = vadd.f32 %v2009_v29, %v2008_v54  ;;  %v1817_v28 = vmul.f32 %v3500_v53, %v3500_v53  ;;  %v1589_v54 = vmul.f32 %v3556_v4, %v3556_v4 }
 0x1c7   : > { %v1251_v38 = vrot.slane %v1250_v3, 2  ;;  %v2019_v49 = vsel %vm1873_vm4, %v1818_v22, 0.0  ;;  %v1590_v22 = vmul.f32 %v3594_v63, %v3594_v63 }
 0x1c8   : > { %v1257_v52 = vrot.slane %v1256_v39, 2  ;;  %v2012_v46 = vadd.f32 %v2011_v31, %v2010_v37  ;;  %v1597_v37 = vsel %vm1595_vm5, %v1588_v0, 0.0  ;;  %v1599_v48 = vsel %vm1595_vm5, %v1589_v54, 0.0 }
 0x1c9   : > { %v1252_v1 = vadd.f32 %v1251_v38, %v1250_v3  ;;  %v1819_v3 = vmul.f32 %v3470_v20, %v3470_v20  ;;  %v1823_v54 = vmul.f32 %v3365_v51, %v3365_v51  ;;  %v1825_v51 = vmul.f32 %v3667_v36, %v3667_v36 }
 0x1ca   : > { %v1182_v30 = vpop.f32.mrf.mxu2  ;;  %v1258_v35 = vadd.f32 %v1257_v52, %v1256_v39  ;;  %v2014_v39 = vadd.f32 %v2013_v17, %v2012_v46  ;;  %v1821_v17 = vmul.f32 %v3393_v60, %v3393_v60  ;;  %v1598_v46 = vadd.f32 %v1597_v37, %v1596_v55 }
 0x1cb   : > { %v1202_v12 = vpop.f32.mrf.mxu3  ;;  %v1183_v5 = vadd.f32 %v1182_v30, %v3418_v27  ;;  %v1253_v50 = vrot.slane %v1252_v1, 1  ;;  %v1822_v60 = vmul.f32 %v3378_v42, %v3378_v42  ;;  %v1824_v42 = vmul.f32 %v3348_v59, %v3348_v59 }
 0x1cc   : > { %v1203_v13 = vadd.f32 %v1202_v12, %v3418_v27  ;;  %v1259_v26 = vrot.slane %v1258_v35, 1  ;;  %v2017_v27 = vsel %vm1873_vm4, %v1817_v28, 0.0  ;;  %v2016_v31 = vadd.f32 %v2015_v18, %v2014_v39 }
 0x1cd   : > { %v1211_v53 = vmax.f32 %v1183_v5, 0.0  ;;  %v1254_v38 = vadd.f32 %v1253_v50, %v1252_v1  ;;  %v2025_v55 = vsel %vm1873_vm4, %v1821_v17, 0.0  ;;  %v1600_v63 = vadd.f32 %v1599_v48, %v1598_v46 }
 0x1ce   : > { %v1212_v29 = vmax.f32 %v1203_v13, 0.0  ;;  %v1260_v4 = vadd.f32 %v1259_v26, %v1258_v35  ;;  %v2018_v1 = vadd.f32 %v2017_v27, %v2016_v31  ;;  %v2027_v37 = vsel %vm1873_vm4, %v1822_v60, 0.0 }
 0x1cf   : > { %v1223_v52 = vmul.f32 %v3437_v8, %v1211_v53  ;;  %v1282_v20 = vadd.f32 %v3518_v41, %v1254_v38  ;;  %v2023_v53 = vsel %vm1873_vm4, %v1820_v25, 0.0  ;;  %v1601_v38 = vsel %vm1595_vm5, %v1590_v22, 0.0 }
 0x1d0   : > { %v1224_v24 = vmul.f32 %v3437_v8, %v1212_v29  ;;  %v1283_v28 = vadd.f32 %v3518_v41, %v1260_v4  ;;  %v2021_v8 = vsel %vm1873_vm4, %v1819_v3, 0.0  ;;  %v2020_v18 = vadd.f32 %v2019_v49, %v2018_v1 }
 0x1d1   : > { %v1261_v30 = vrot.slane %v1223_v52, 4  ;;  %v1290_v5 = vmax.f32 %v1282_v20, 0.0  ;;  %v1826_v59 = vmul.f32 %v3650_v58, %v3650_v58  ;;  %v1827_v36 = vmul.f32 %v3633_v6, %v3633_v6 }
 0x1d2   : > { %v1267_v12 = vrot.slane %v1224_v24, 4  ;;  %v1291_v13 = vmax.f32 %v1283_v28, 0.0  ;;  %v2022_v3 = vadd.f32 %v2021_v8, %v2020_v18  ;;  %v1602_v28 = vadd.f32 %v1601_v38, %v1600_v63 }
 0x1d3   : > { %v1262_v35 = vadd.f32 %v1261_v30, %v1223_v52  ;;  %1519 = vmatmul.f32.vlgmr.msrb.gmra.mxu0 %v1290_v5  ;;  %v1591_v29 = vmul.f32 %v1290_v5, %v1290_v5  ;;  %v1828_v58 = vmul.f32 %v3614_v23, %v3614_v23  ;;  %v1829_v6 = vmul.f32 %v3589_v56, %v3589_v56 }
 0x1d4   : > { %v1268_v0 = vadd.f32 %v1267_v12, %v1224_v24  ;;  %1539 = vmatmul.f32.vlgmr.msrb.gmra.mxu1 %v1291_v13  ;;  %v2024_v4 = vadd.f32 %v2023_v53, %v2022_v3  ;;  %v2029_v12 = vsel %vm1873_vm4, %v1823_v54, 0.0  ;;  %v1592_v20 = vmul.f32 %v1291_v13, %v1291_v13 }
 0x1d5   : > { %v1263_v50 = vrot.slane %v1262_v35, 2  ;;  %v1603_v25 = vsel %vm1595_vm5, %v1591_v29, 0.0  ;;  %v2033_v13 = vsel %vm1873_vm4, %v1825_v51, 0.0  ;;  %v2037_v3 = vsel %vm1873_vm4, %v1827_v36, 0.0 }
 0x1d6   : > { %v1269_v26 = vrot.slane %v1268_v0, 2  ;;  %v2026_v31 = vadd.f32 %v2025_v55, %v2024_v4  ;;  %v1605_v22 = vsel %vm1595_vm5, %v1592_v20, 0.0  ;;  %v1830_v55 = vmul.f32 %v3568_v61, %v3568_v61 }
 0x1d7   : > { %v1264_v39 = vadd.f32 %v1263_v50, %v1262_v35  ;;  %v2031_v35 = vsel %vm1873_vm4, %v1824_v42, 0.0  ;;  %v2039_v23 = vsel %vm1873_vm4, %v1828_v58, 0.0  ;;  %v1831_v4 = vmul.f32 %v3544_v33, %v3544_v33 }
 0x1d8   : > { %v1270_v27 = vadd.f32 %v1269_v26, %v1268_v0  ;;  %v2028_v17 = vadd.f32 %v2027_v37, %v2026_v31  ;;  %v1604_v0 = vadd.f32 %v1603_v25, %v1602_v28  ;;  %v2035_v26 = vsel %vm1873_vm4, %v1826_v59, 0.0 }
 0x1d9   : > { %v1265_v52 = vrot.slane %v1264_v39, 1  ;;  %v2043_v42 = vsel %vm1873_vm4, %v1830_v55, 0.0  ;;  %v1833_v61 = vmul.f32 %v3503_v21, %v3503_v21  ;;  %v2045_v25 = vsel %vm1873_vm4, %v1831_v4, 0.0 }
 0x1da   : > { %v1271_v24 = vrot.slane %v1270_v27, 1  ;;  %v2030_v5 = vadd.f32 %v2029_v12, %v2028_v17  ;;  %v1606_v60 = vadd.f32 %v1605_v22, %v1604_v0  ;;  %v1835_v51 = vmul.f32 %v3473_v2, %v3473_v2 }
 0x1db   : > { %v1266_v49 = vadd.f32 %v1265_v52, %v1264_v39  ;;  %v2041_v52 = vsel %vm1873_vm4, %v1829_v6, 0.0  ;;  %v1836_v20 = vmul.f32 %v3464_v9, %v3464_v9  ;;  %v1837_v17 = vmul.f32 %v3396_v62, %v3396_v62 }
 0x1dc   : > { %v1272_v30 = vadd.f32 %v1271_v24, %v1270_v27  ;;  %v2032_v18 = vadd.f32 %v2031_v35, %v2030_v5  ;;  %v1832_v24 = vmul.f32 %v3524_v10, %v3524_v10  ;;  %v2049_v10 = vsel %vm1873_vm4, %v1833_v61, 0.0 }
 0x1dd   : > { %v1284_v1 = vadd.f32 %v3518_v41, %v1266_v49  ;;  %v1834_v49 = vmul.f32 %v3484_v43, %v3484_v43  ;;  %v2053_v43 = vsel %vm1873_vm4, %v1835_v51, 0.0  ;;  %v2055_v2 = vsel %vm1873_vm4, %v1836_v20, 0.0  ;;  %v4037_v51 = vld [vmem:[#allocation7_spill] sm:$0xff] }
 0x1de   : > { %v1285_v8 = vadd.f32 %v3518_v41, %v1272_v30  ;;  %v2034_v53 = vadd.f32 %v2033_v13, %v2032_v18  ;;  %v2047_v33 = vsel %vm1873_vm4, %v1832_v24, 0.0  ;;  %v1839_v35 = vmul.f32 %v3368_v34, %v3368_v34 }
 0x1df   : > { %v1292_v48 = vmax.f32 %v1284_v1, 0.0  ;;  %v2051_v21 = vsel %vm1873_vm4, %v1834_v49, 0.0  ;;  %v2057_v9 = vsel %vm1873_vm4, %v1837_v17, 0.0  ;;  %v1840_v5 = vmul.f32 %v3356_v19, %v3356_v19 }
 0x1e0   : > { %v1293_v46 = vmax.f32 %v1285_v8, 0.0  ;;  %v2036_v27 = vadd.f32 %v2035_v26, %v2034_v53  ;;  %v1838_v8 = vmul.f32 %v3381_v45, %v3381_v45  ;;  %v2061_v45 = vsel %vm1873_vm4, %v1839_v35, 0.0  ;;  %v4040_v35 = vld [vmem:[#allocation25_spill] sm:$0xff] }
 0x1e1   : > { %1559 = vmatmul.f32.vlgmr.msrb.gmra.mxu2 %v1292_v48  ;;  %v1593_v41 = vmul.f32 %v1292_v48, %v1292_v48  ;;  %v1842_v13 = vmul.f32 %v3723_v7, %v3723_v7  ;;  %v2063_v34 = vsel %vm1873_vm4, %v1840_v5, 0.0  ;;  %v1843_v18 = vmul.f32 %v3714_v40, %v3714_v40 }
 0x1e2   : > { %1579 = vmatmul.f32.vlgmr.msrb.gmra.mxu3 %v1293_v46  ;;  %v1594_v50 = vmul.f32 %v1293_v46, %v1293_v46  ;;  %v2038_v38 = vadd.f32 %v2037_v3, %v2036_v27  ;;  %v2059_v62 = vsel %vm1873_vm4, %v1838_v8, 0.0  ;;  %v1841_v46 = vmul.f32 %v3736_v11, %v3736_v11 }
 0x1e3   : > { %v1607_v29 = vsel %vm1595_vm5, %v1593_v41, 0.0  ;;  %v2067_v11 = vsel %vm1873_vm4, %v1842_v13, 0.0  ;;  %v1845_v26 = vmul.f32 %v3694_v16, %v3694_v16  ;;  %v2069_v7 = vsel %vm1873_vm4, %v1843_v18, 0.0  ;;  %v4043_v18 = vld [vmem:[#allocation22_spill] sm:$0xff] }
 0x1e4   : > { %v1608_v39 = vadd.f32 %v1607_v29, %v1606_v60  ;;  %v1609_v54 = vsel %vm1595_vm5, %v1594_v50, 0.0  ;;  %v2040_v56 = vadd.f32 %v2039_v23, %v2038_v38  ;;  %v2065_v19 = vsel %vm1873_vm4, %v1841_v46, 0.0  ;;  %v4033_v38 = vld [vmem:[#allocation15_spill] sm:$0xff] }
 0x1e5   : > { %v1844_v50 = vmul.f32 %v3705_v14, %v3705_v14  ;;  %v1846_v53 = vmul.f32 %v3683_v32, %v3683_v32  ;;  %v1847_v6 = vmul.f32 %v3671_v44, %v3671_v44  ;;  %v2073_v14 = vsel %vm1873_vm4, %v1845_v26, 0.0 }
 0x1e6   : > { %v1610_v63 = vadd.f32 %v1609_v54, %v1608_v39  ;;  %v2042_v37 = vadd.f32 %v2041_v52, %v2040_v56  ;;  %v1848_v39 = vmul.f32 %v3655_v15, %v3655_v15  ;;  %v1849_v54 = vmul.f32 %v3638_v47, %v3638_v47  ;;  %v4034_v56 = vld [vmem:[#allocation13_spill] sm:$0xff] }
 0x1e7   : > { %v2071_v40 = vsel %vm1873_vm4, %v1844_v50, 0.0  ;;  %v2075_v16 = vsel %vm1873_vm4, %v1846_v53, 0.0  ;;  %v2077_v32 = vsel %vm1873_vm4, %v1847_v6, 0.0  ;;  %v1850_v23 = vmul.f32 %v3619_v57, %v3619_v57  ;;  %v4046_v6 = vld [vmem:[#allocation19_spill] sm:$0xff] }
 0x1e8   : > { %1611 = vadd.xlane.f32.xlu1 %v1610_v63  ;;  %v2044_v31 = vadd.f32 %v2043_v42, %v2042_v37  ;;  %v2079_v44 = vsel %vm1873_vm4, %v1848_v39, 0.0  ;;  %v1851_v4 = vmul.f32 %v4033_v38, %v4033_v38  ;;  %v2081_v15 = vsel %vm1873_vm4, %v1849_v54, 0.0  ;;  %v4035_v37 = vld [vmem:[#allocation11_spill] sm:$0xff]  ;;  %v4049_v38 = vld [vmem:[#allocation16_spill] sm:$0xff] }
 0x1e9   : > { %v1852_v24 = vmul.f32 %v4034_v56, %v4034_v56  ;;  %v2083_v47 = vsel %vm1873_vm4, %v1850_v23, 0.0  ;;  %v1853_v61 = vmul.f32 %v4035_v37, %v4035_v37  ;;  %v4050_v56 = vld [vmem:[#allocation14_spill] sm:$0xff]  ;;  %v4051_v37 = vld [vmem:[#allocation12_spill] sm:$0xff] }
 0x1ea   : > { %v2046_v30 = vadd.f32 %v2045_v25, %v2044_v31  ;;  %v2085_v57 = vsel %vm1873_vm4, %v1851_v4, 0.0  ;;  %v4036_v31 = vld [vmem:[#allocation9_spill] sm:$0xff]  ;;  %v1867_v4 = vmul.f32 %v4049_v38, %v4049_v38 }
 0x1eb   : > { %v1854_v49 = vmul.f32 %v4036_v31, %v4036_v31  ;;  %v4052_v31 = vld [vmem:[#allocation10_spill] sm:$0xff] }
 0x1ec   : > { %v2048_v12 = vadd.f32 %v2047_v33, %v2046_v30  ;;  %v2087_v33 = vsel %vm1873_vm4, %v1852_v24, 0.0  ;;  %v1868_v24 = vmul.f32 %v4050_v56, %v4050_v56 }
 0x1ed   : > { %v2091_v17 = vsel %vm1873_vm4, %v1854_v49, 0.0  ;;  %v1870_v49 = vmul.f32 %v4052_v31, %v4052_v31 }
 0x1ee   : > { %v2050_v28 = vadd.f32 %v2049_v10, %v2048_v12  ;;  %v1855_v10 = vmul.f32 %v4037_v51, %v4037_v51  ;;  %v2089_v12 = vsel %vm1873_vm4, %v1853_v61, 0.0  ;;  %v1869_v61 = vmul.f32 %v4051_v37, %v4051_v37  ;;  %v4053_v51 = vld [vmem:[#allocation8_spill] sm:$0xff] }
 0x1f0   : > { %v2052_v1 = vadd.f32 %v2051_v21, %v2050_v28  ;;  %v4038_v21 = vld [vmem:[#allocation5_spill] sm:$0xff] }
 0x1f1   : > { %v1856_v28 = vmul.f32 %v4038_v21, %v4038_v21  ;;  %v4054_v21 = vld [vmem:[#allocation6_spill] sm:$0xff] }
 0x1f2   : > { %v2054_v59 = vadd.f32 %v2053_v43, %v2052_v1  ;;  %v4039_v1 = vld [vmem:[#allocation26_spill] sm:$0xff] }
 0x1f3   : > { %v1857_v8 = vmul.f32 %v4039_v1, %v4039_v1 }
 0x1f4   : > { %v2056_v0 = vadd.f32 %v2055_v2, %v2054_v59  ;;  %v2093_v2 = vsel %vm1873_vm4, %v1855_v10, 0.0  ;;  %v1871_v10 = vmul.f32 %v4053_v51, %v4053_v51 }
 0x1f5   : > { %v2097_v46 = vsel %vm1873_vm4, %v1857_v8, 0.0 }
 0x1f6   : > { %v2058_v48 = vadd.f32 %v2057_v9, %v2056_v0  ;;  %v1858_v9 = vmul.f32 %v4040_v35, %v4040_v35  ;;  %v2095_v0 = vsel %vm1873_vm4, %v1856_v28, 0.0  ;;  %v1872_v28 = vmul.f32 %v4054_v21, %v4054_v21 }
 0x1f7   : > { %v2125_v1 = vsel %vm1873_vm4, %v1871_v10, 0.0 }
 0x1f8   : > { %v2060_v36 = vadd.f32 %v2059_v62, %v2058_v48  ;;  %v4041_v62 = vld [vmem:[#allocation24_spill] sm:$0xff] }
 0x1f9   : > { %v1859_v48 = vmul.f32 %v4041_v62, %v4041_v62 }
 0x1fa   : > { %v2062_v22 = vadd.f32 %v2061_v45, %v2060_v36  ;;  %v4042_v36 = vld [vmem:[#allocation23_spill] sm:$0xff] }
 0x1fb   : > { %v1860_v13 = vmul.f32 %v4042_v36, %v4042_v36 }
 0x1fc   : > { %v2064_v41 = vadd.f32 %v2063_v34, %v2062_v22  ;;  %v2099_v34 = vsel %vm1873_vm4, %v1858_v9, 0.0 }
 0x1fd   : > { %v2103_v26 = vsel %vm1873_vm4, %v1860_v13, 0.0 }
 0x1fe   : > { %v2066_v58 = vadd.f32 %v2065_v19, %v2064_v41  ;;  %v1861_v19 = vmul.f32 %v4043_v18, %v4043_v18  ;;  %v2101_v41 = vsel %vm1873_vm4, %v1859_v48, 0.0 }
 0x200   : > { %v2068_v60 = vadd.f32 %v2067_v11, %v2066_v58  ;;  %v4044_v11 = vld [vmem:[#allocation21_spill] sm:$0xff] }
 0x201   : > { %v1862_v58 = vmul.f32 %v4044_v11, %v4044_v11 }
 0x202   : > { %v2070_v29 = vadd.f32 %v2069_v7, %v2068_v60  ;;  %v4045_v60 = vld [vmem:[#allocation20_spill] sm:$0xff] }
 0x203   : > { %v1863_v53 = vmul.f32 %v4045_v60, %v4045_v60 }
 0x204   : > { %v2072_v3 = vadd.f32 %v2071_v40, %v2070_v29  ;;  %v2105_v40 = vsel %vm1873_vm4, %v1861_v19, 0.0 }
 0x205   : > { %v2109_v54 = vsel %vm1873_vm4, %v1863_v53, 0.0 }
 0x206   : > { %v2074_v27 = vadd.f32 %v2073_v14, %v2072_v3  ;;  %v1864_v14 = vmul.f32 %v4046_v6, %v4046_v6  ;;  %v2107_v3 = vsel %vm1873_vm4, %v1862_v58, 0.0 }
 0x208   : > { %v2076_v55 = vadd.f32 %v2075_v16, %v2074_v27  ;;  %v4047_v16 = vld [vmem:[#allocation18_spill] sm:$0xff] }
 0x209   : > { %v1865_v27 = vmul.f32 %v4047_v16, %v4047_v16 }
 0x20a   : > { %v2078_v63 = vadd.f32 %v2077_v32, %v2076_v55  ;;  %v4048_v55 = vld [vmem:[#allocation17_spill] sm:$0xff] }
 0x20b   : > { %v1866_v23 = vmul.f32 %v4048_v55, %v4048_v55 }
 0x20c   : > { %v2080_v52 = vadd.f32 %v2079_v44, %v2078_v63  ;;  %v2111_v44 = vsel %vm1873_vm4, %v1864_v14, 0.0  ;;  %v1294_v14 = vld [vmem:[#allocation2] sm:$0x1] }
 0x20e   : > { %v2082_v42 = vadd.f32 %v2081_v15, %v2080_v52  ;;  %v2113_v15 = vsel %vm1873_vm4, %v1865_v27, 0.0 }
 0x210   : > { %v2084_v25 = vadd.f32 %v2083_v47, %v2082_v42  ;;  %v2115_v47 = vsel %vm1873_vm4, %v1866_v23, 0.0 }
 0x212   : > { %v2086_v30 = vadd.f32 %v2085_v57, %v2084_v25  ;;  %v2117_v57 = vsel %vm1873_vm4, %v1867_v4, 0.0 }
 0x214   : > { %v2088_v20 = vadd.f32 %v2087_v33, %v2086_v30  ;;  %v2119_v33 = vsel %vm1873_vm4, %v1868_v24, 0.0 }
 0x216   : > { %v2090_v43 = vadd.f32 %v2089_v12, %v2088_v20  ;;  %v2121_v12 = vsel %vm1873_vm4, %v1869_v61, 0.0 }
 0x218   : > { %v2092_v59 = vadd.f32 %v2091_v17, %v2090_v43  ;;  %v2123_v17 = vsel %vm1873_vm4, %v1870_v49, 0.0 }
 0x21a   : > { %v2094_v5 = vadd.f32 %v2093_v2, %v2092_v59  ;;  %v2127_v2 = vsel %vm1873_vm4, %v1872_v28, 0.0 }
 0x21c   : > { %v2096_v45 = vadd.f32 %v2095_v0, %v2094_v5 }
 0x21e   : > { %v2098_v22 = vadd.f32 %v2097_v46, %v2096_v45  ;;  %v1616_v46 = vld [vmem:[#allocation3] sm:$0x1] }
 0x220   : > { %v2100_v50 = vadd.f32 %v2099_v34, %v2098_v22 }
 0x221   : > { %v1440_v13 = vpop.f32.mrf.mxu0 }
 0x222   : > { %v2102_v7 = vadd.f32 %v2101_v41, %v2100_v50  ;;  %v1586_v50 = vld [vmem:[#allocation4] sm:$0x1] }
 0x224   : > { %v2104_v29 = vadd.f32 %v2103_v26, %v2102_v7  ;;  %v1480_v18 = vpop.f32.mrf.mxu2 }
 0x225   : > { %v1460_v34 = vpop.f32.mrf.mxu1 }
 0x226   : > { %v2106_v39 = vadd.f32 %v2105_v40, %v2104_v29  ;;  %v1461_v22 = vadd.f32 %v1460_v34, %v1440_v13 }
 0x228   : > { %v2108_v32 = vadd.f32 %v2107_v3, %v2106_v39  ;;  %v1481_v19 = vadd.f32 %v1480_v18, %v1461_v22 }
 0x229   : > { %v1500_v41 = vpop.f32.mrf.mxu3 }
 0x22a   : > { %v2110_v63 = vadd.f32 %v2109_v54, %v2108_v32  ;;  %v1501_v11 = vadd.f32 %v1500_v41, %v1481_v19 }
 0x22c   : > { %v2112_v52 = vadd.f32 %v2111_v44, %v2110_v63 }
 0x22e   : > { %v2114_v42 = vadd.f32 %v2113_v15, %v2112_v52 }
 0x230   : > { %v2116_v25 = vadd.f32 %v2115_v47, %v2114_v42 }
 0x232   : > { %v2118_v30 = vadd.f32 %v2117_v57, %v2116_v25 }
 0x234   : > { %v2120_v20 = vadd.f32 %v2119_v33, %v2118_v30 }
 0x236   : > { %v2122_v43 = vadd.f32 %v2121_v12, %v2120_v20 }
 0x238   : > { %v2124_v8 = vadd.f32 %v2123_v17, %v2122_v43 }
 0x23a   : > { %v2126_v59 = vadd.f32 %v2125_v1, %v2124_v8 }
 0x23c   : > { %v2128_v35 = vadd.f32 %v2127_v2, %v2126_v59 }
 0x23e   : > { %v2129_v9 = vrot.slane %v2128_v35, 4 }
 0x240   : > { %v2130_v0 = vadd.f32 %v2129_v9, %v2128_v35 }
 0x242   : > { %v2131_v5 = vrot.slane %v2130_v0, 2 }
 0x244   : > { %v2132_v62 = vadd.f32 %v2131_v5, %v2130_v0 }
 0x246   : > { %v2133_v48 = vrot.slane %v2132_v62, 1 }
 0x248   : > { %v2134_v45 = vadd.f32 %v2133_v48, %v2132_v62 }
 0x24a   : > { %v2135_v36 = vadd.f32 %v2134_v45, %v1616_v46 }
 0x24c   : > { %2136 = vst.msk [vmem:[#allocation3] sm:$0x1] %vm1584_vm6, %v2135_v36 }
 0x250   : > { %v1520_v26 = vpop.f32.mrf.mxu0 }
 0x251   : > { %v1521_v60 = vadd.f32 %v1520_v26, %v1501_v11  ;;  %v1540_v53 = vpop.f32.mrf.mxu1 }
 0x253   : > { %v1541_v40 = vadd.f32 %v1540_v53, %v1521_v60 }
 0x25b   : > { %v1612_v58 = vpop.xlane.xlu1 %1611 }
 0x25c   : > { %v1613_v7 = vadd.f32 %v1612_v58, %v1586_v50 }
 0x25e   : > { %1615 = vst.msk [vmem:[#allocation4] sm:$0x1] %vm1614_vm7, %v1613_v7 }
 0x264   : > { %v1560_v29 = vpop.f32.mrf.mxu2 }
 0x265   : > { %v1561_v6 = vadd.f32 %v1560_v29, %v1541_v40  ;;  %v1580_v3 = vpop.f32.mrf.mxu3 }
 0x267   : > { %v1581_v39 = vadd.f32 %v1580_v3, %v1561_v6  ;;  %2140 = sbr.rel (%p2505_p8) target bundleno = 938 (0x3aa), region = 40 }
 0x269   : > { %v1583_v16 = vadd.f32 %v1581_v39, %v1294_v14 }
 0x26b   : > { %1585 = vst.msk [vmem:[#allocation2] sm:$0x1] %vm1584_vm6, %v1583_v16 }
 0x26c   : > { %v2141_v27 = vld [vmem:[#allocation4] sm:$0x1]  ;;  %v2621_v54 = vmov 0   ;;  %v2154_v24 = vld [vmem:[#allocation3] sm:$0x1]  ;;  %v2622_v20 = vmov 2.0  }
 0x26d   : > { %2567 = vset.pattern.permute.xlu0 %v2621_v54  ;;  %2568 = vrsqrt.f32 %v2141_v27  ;;  %vm2149_vm8 = vcmp.eq.f32.partialorder %v2141_v27, inf  ;;  %v2152_v4 = vand.u32 2147483648, %v2141_v27  ;;  %vm2151_vm9 = vcmp.eq.f32.partialorder %v2141_v27, 0.0 }
 0x26e   : > { %2570 = vrsqrt.f32 %v2154_v24  ;;  %vm2162_vm10 = vcmp.eq.f32.partialorder %v2154_v24, inf  ;;  %v2165_v49 = vand.u32 2147483648, %v2154_v24  ;;  %vm2164_vm11 = vcmp.eq.f32.partialorder %v2154_v24, 0.0 }
 0x26f   : > { %v2623_v13 = vmov 0.0  }
 0x272   : > { %v2167_v9 = vld [vmem:[#allocation2] sm:$0x1] }
 0x273   : > { %v2569_v32 = vpop.eup %2568 }
 0x274   : > { %v2143_v55 = vmul.f32 %v2569_v32, %v2141_v27  ;;  %v2571_v47 = vpop.eup %2570 }
 0x275   : > { %v2156_v42 = vmul.f32 %v2571_v47, %v2154_v24 }
 0x276   : > { %v2144_v23 = vmul.f32 %v2569_v32, %v2143_v55 }
 0x277   : > { %v2157_v37 = vmul.f32 %v2571_v47, %v2156_v42 }
 0x278   : > { %v2145_v44 = vmul.f32 0.5, %v2144_v23 }
 0x279   : > { %v2158_v61 = vmul.f32 0.5, %v2157_v37 }
 0x27a   : > { %v2146_v63 = vsub.f32 1.5, %v2145_v44 }
 0x27b   : > { %v2159_v57 = vsub.f32 1.5, %v2158_v61 }
 0x27c   : > { %v2147_v38 = vmul.f32 %v2569_v32, %v2146_v63 }
 0x27d   : > { %v2160_v25 = vmul.f32 %v2571_v47, %v2159_v57 }
 0x27e   : > { %v2148_v15 = vmul.f32 %v2147_v38, %v2141_v27 }
 0x27f   : > { %v2161_v31 = vmul.f32 %v2160_v25, %v2154_v24 }
 0x280   : > { %v2150_v52 = vsel %vm2149_vm8, %v2141_v27, %v2148_v15 }
 0x281   : > { %v2153_v56 = vsel %vm2151_vm9, %v2152_v4, %v2150_v52  ;;  %v2163_v33 = vsel %vm2162_vm10, %v2154_v24, %v2161_v31  ;;  %vm2248_vm10 = vcmask 155648  }
 0x282   : > { %2170 = vperm.xlu0 %2567, %v2153_v56   ;;  %v2166_v30 = vsel %vm2164_vm11, %v2165_v49, %v2163_v33 }
 0x2f4   : > { %v2171_v51 = vpop.permute.xlu0 %2170 }
 0x2f5   : > { %v3959_v10 = vperm.slane %v2171_v51, 0 }
 0x2f7   : > { %v2174_v12 = vmul.f32 %v3959_v10, %v2166_v30 }
 0x2f9   : > { %2572 = vrcp.f32 %v2174_v12  ;;  %v2186_v1 = vand.u32 2147483648, %v2174_v12  ;;  %v2184_v2 = vand.u32 2147483647, %v2174_v12  ;;  %vm2180_vm13 = vweird.f32 %v2174_v12 }
 0x2fa   : > { %2574 = vrcp.f32 %v2622_v20 }
 0x2fb   : > { %v2187_v0 = vor.u32 1.1754944e-38, %v2186_v1  ;;  %vm2185_vm15 = vcmp.eq.f32.partialorder %v2184_v2, 8.507059e+37 }
 0x2ff   : > { %v2573_v21 = vpop.eup %2572 }
 0x300   : > { %v2176_v28 = vmul.f32 %v2573_v21, %v2174_v12  ;;  %v2575_v17 = vpop.eup %2574  ;;  %vm2181_vm12 = vweird.f32 %v2573_v21 }
 0x301   : > { %v2215_v59 = vmul.f32 2.0, %v2575_v17  ;;  %vm2182_vm14 = vmor %vm2180_vm13, %vm2181_vm12  ;;  %vm2219_vm5 = vweird.f32 %v2575_v17 }
 0x302   : > { %v2177_v43 = vsub.f32 1.0, %v2176_v28 }
 0x303   : > { %v2216_v48 = vsub.f32 1.0, %v2215_v59 }
 0x304   : > { %v2178_v8 = vmul.f32 %v2573_v21, %v2177_v43 }
 0x305   : > { %v2217_v36 = vmul.f32 %v2575_v17, %v2216_v48 }
 0x306   : > { %v2179_v35 = vadd.f32 %v2573_v21, %v2178_v8 }
 0x307   : > { %v2218_v50 = vadd.f32 %v2575_v17, %v2217_v36 }
 0x308   : > { %v2183_v5 = vsel %vm2182_vm14, %v2573_v21, %v2179_v35 }
 0x309   : > { %v2188_v62 = vsel %vm2185_vm15, %v2187_v0, %v2183_v5  ;;  %v2220_v7 = vsel %vm2219_vm5, %v2575_v17, %v2218_v50 }
 0x30a   : > { %v2189_v46 = vmul.f32 %v2188_v62, %v2167_v9 }
 0x30c   : > { %v2506_v45 = vclamps-f32 %v2189_v46, 1.0 }
 0x30e   : > { %vm2197_vm0 = vcmp.le.f32.partialorder %v2506_v45, 0.70710677  ;;  %vm2201_vm1 = vcmp.le.f32.partialorder %v2506_v45, 1.7948966e-09  ;;  %vm2205_vm2 = vcmp.le.f32.partialorder %v2506_v45, -0.70710677  ;;  %v2240_v19 = vmul.f32 %v2506_v45, %v3959_v10 }
 0x30f   : > { %v2507_v34 = vsel %vm2197_vm0, 1.0, %v2623_v13  ;;  %v2508_v22 = vsel %vm2201_vm1, 1.0, %v2623_v13  ;;  %vm2209_vm3 = vcmp.le.f32.partialorder %v2506_v45, -1.0  ;;  %v2509_v41 = vsel %vm2205_vm2, 1.0, %v2623_v13 }
 0x310   : > { %v2204_v18 = vadd.f32 %v2508_v22, %v2507_v34  ;;  %v2510_v58 = vsel %vm2209_vm3, 1.0, %v2623_v13  ;;  %v2192_v29 = vmul.f32 %v2506_v45, %v2506_v45 }
 0x312   : > { %v2208_v11 = vadd.f32 %v2509_v41, %v2204_v18  ;;  %v2193_v3 = vmul.f32 8.0, %v2192_v29 }
 0x314   : > { %v2212_v26 = vadd.f32 %v2510_v58, %v2208_v11  ;;  %v2194_v54 = vmul.f32 %v2193_v3, %v2192_v29 }
 0x316   : > { %v2213_v60 = vand.u32 2147483647, %v2212_v26  ;;  %v2228_v27 = vand.u32 2147483648, %v2212_v26  ;;  %v2195_v23 = vsub.f32 %v2194_v54, %v2193_v3  ;;  %v2238_v52 = vmul.f32 2.0, %v2212_v26 }
 0x318   : > { %v2221_v53 = vmul.f32 %v2220_v7, %v2213_v60  ;;  %v2196_v38 = vadd.f32 1.0, %v2195_v23 }
 0x31a   : > { %v2222_v40 = vfloor.f32 %v2221_v53 }
 0x31c   : > { %v2223_v6 = vmul.f32 2.0, %v2222_v40 }
 0x31e   : > { %v2224_v14 = vsub.f32 %v2213_v60, %v2223_v6 }
 0x320   : > { %vm2225_vm6 = vcmp.eq.f32.partialorder %v2224_v14, 2.0 }
 0x321   : > { %v2226_v39 = vsel %vm2225_vm6, 0.0, %v2224_v14 }
 0x322   : > { %v2227_v16 = vand.u32 2147483647, %v2226_v39 }
 0x324   : > { %v2229_v32 = vor.u32 %v2228_v27, %v2227_v16 }
 0x326   : > { %vm2230_vm7 = vcmp.ne.f32.partialorder %v2229_v32, 0.0  ;;  %vm2231_vm8 = vcmp.lt.f32.partialorder %v2229_v32, 0.0  ;;  %v2233_v55 = vadd.f32 2.0, %v2229_v32 }
 0x327   : > { %vm2232_vm9 = vmand %vm2231_vm8, %vm2230_vm7 }
 0x328   : > { %v2234_v44 = vsel %vm2232_vm9, %v2233_v55, %v2229_v32 }
 0x329   : > { %v2235_v63 = vmul.f32 2.0, %v2234_v44 }
 0x32b   : > { %v2236_v4 = vsub.f32 1.0, %v2235_v63 }
 0x32d   : > { %v2237_v15 = vmul.f32 %v2236_v4, %v2196_v38 }
 0x32f   : > { %v2239_v56 = vsub.f32 %v2237_v15, %v2238_v52 }
 0x331   : > { %v2241_v24 = vmul.f32 %v2239_v56, %v3959_v10 }
 0x333   : > { %v2243_v47 = vperm.slane %v2241_v24, 0 }
 0x335   : > { %2244 = vrot.lane.b32.xlu0 %v2243_v47, %s2624_s12 }
 0x3a7   : > { %v2245_v42 = vpop.permute.xlu0 %2244 }
 0x3a8   : > { %v2247_v37 = vsel %vm1873_vm4, %v2240_v19, %v2245_v42 }
 0x3a9   : > { %2249 = vst.msk [vmem:[%s216_s23] sm:$0x1] %vm2248_vm10, %v2247_v37 }
 0x3aa PF: > { %s13_s16 = sadd.s32 1, %s2614_s16   ;;  %s4055_s12 = smov %s2606_s14 }
 0x3ab   : > { %p10_p9 = scmp.ge.s32.totalorder %s13_s16, 6   ;;  %s4056_s13 = smov %s2610_s15 }
 0x3ac   : > { %s4057_s14 = smov %s4060_s17  ;;  %s4058_s15 = smov %s4064_s18 }
 0x3ad   :  { %12 = sbr.rel (!%p10_p9) target bundleno = 3 (0x3), region = 73 }

</bundles_post_ra>
